<compile_context>
chip_gen: v7x
topology: tpu7x:2x2x1
jax: 0.10.0
libtpu: 0.0.40
codegen_flags: <defaults>
</compile_context>

<pallas_src>
import functools

import jax
import jax.numpy as jnp
from jax.experimental import pallas as pl
from jax.experimental.pallas import tpu as pltpu


# ----------------------------------------------------------------------------
# helpers
# ----------------------------------------------------------------------------
def _round_up(x, m):
    return ((x + m - 1) // m) * m


# ----------------------------------------------------------------------------
# Fused LSTM + MDN kernel: grid = (batch shards, time chunks)
# ----------------------------------------------------------------------------
def _mdnrnn_kernel(x_ref, wih_ref, whh_ref, bl_ref, wmdn_ref, bmdn_ref, tau_ref,
                   pi_ref, mu_ref, sig_ref, hn_ref, cn_ref,
                   gx_sc, hb_sc,
                   *, bs, t_chunk, in_dim, hidden, k, k_pad, kl_pad,
                   seq_len, seq_pad):
    H = hidden
    Tc = t_chunk
    cc = pl.program_id(1)

    # h/c live in the VMEM-resident hn/cn output blocks (constant index_map
    # over the sequential time axis); zero-init at the start of each shard.
    @pl.when(cc == 0)
    def _():
        hn_ref[...] = jnp.zeros_like(hn_ref)
        cn_ref[...] = jnp.zeros_like(cn_ref)

    # --- hoisted input projection: one (Tc*Bs, Din) @ (Din, 4H) bf16 matmul ---
    x2 = x_ref[...].reshape(Tc * bs, in_dim)
    gx = jnp.dot(x2, wih_ref[...],
                 preferred_element_type=jnp.float32) + bl_ref[...]
    gx_sc[...] = gx.reshape(Tc, bs, 4 * H)      # time-major scratch

    whh = whh_ref[...]
    h0 = hn_ref[...]
    c0 = cn_ref[...]

    # --- serial recurrence over the chunk -------------------------------------
    def step(t, carry):
        h, c = carry
        gates = gx_sc[t] + jnp.dot(h.astype(jnp.bfloat16), whh,
                                   preferred_element_type=jnp.float32)
        # gate order is (i, f, o, g): one sigmoid over 3H, one tanh over H
        sig = jax.nn.sigmoid(gates[:, :3 * H])
        g_g = jnp.tanh(gates[:, 3 * H:])
        i_g = sig[:, 0 * H:1 * H]
        f_g = sig[:, 1 * H:2 * H]
        o_g = sig[:, 2 * H:3 * H]
        c_new = f_g * c + i_g * g_g
        h_new = o_g * jnp.tanh(c_new)
        if seq_pad != seq_len:                  # static: only when time padded
            valid = (cc * Tc + t) < seq_len
            h_new = jnp.where(valid, h_new, h)
            c_new = jnp.where(valid, c_new, c)
        hb_sc[t] = h_new.astype(jnp.bfloat16)   # full (Bs, H) tile store
        return h_new, c_new

    h, c = jax.lax.fori_loop(0, Tc, step, (h0, c0), unroll=True)
    hn_ref[...] = h
    cn_ref[...] = c

    # --- fused MDN head: one (Tc*Bs, H) @ (H, Kp+2*KLp) bf16 matmul -----------
    hs = hb_sc[...].reshape(Tc * bs, H)
    y = jnp.dot(hs, wmdn_ref[...],
                preferred_element_type=jnp.float32) + bmdn_ref[...]

    inv_tau = tau_ref[1]
    sqrt_tau = tau_ref[2]

    # pi head: softmax restricted to the first k columns of its 128-lane group
    yp = y[:, :k_pad] * inv_tau
    col = jax.lax.broadcasted_iota(jnp.int32, yp.shape, 1)
    logits = jnp.where(col < k, yp, -1e30)
    m = jnp.max(logits, axis=-1, keepdims=True)
    e = jnp.exp(logits - m)
    denom = jnp.sum(e, axis=-1, keepdims=True)
    pi = e * pl.reciprocal(denom, approx=True) + 1e-15
    pi_ref[...] = pi.reshape(Tc, bs, k_pad)

    # mu head: straight copy (no transcendentals touch these lanes)
    mu_ref[...] = y[:, k_pad:k_pad + kl_pad].reshape(Tc, bs, kl_pad)

    # sigma head: exp only over its own lane group
    sig_v = (jnp.exp(y[:, k_pad + kl_pad:]) + 1e-15) * sqrt_tau
    sig_ref[...] = sig_v.reshape(Tc, bs, kl_pad)


# ----------------------------------------------------------------------------
# MDNRNN forward wrapper
# ----------------------------------------------------------------------------
def mdnrnn_forward(params, z, a, tau, hidden_dim, num_gaussians, latent_dim):
    f32, bf16 = jnp.float32, jnp.bfloat16
    B, T, _ = z.shape
    H = hidden_dim
    K, L = num_gaussians, latent_dim
    KL = K * L
    Din = z.shape[-1] + a.shape[-1]

    Kp = _round_up(K, 128)
    KLp = _round_up(KL, 128)
    dtot = Kp + 2 * KLp

    # ---- weight prep: gate reorder (i,f,g,o)->(i,f,o,g), bf16 cast -----------
    def reorder_gates(w):
        i, f, g, o = jnp.split(w, 4, axis=-1)
        return jnp.concatenate([i, f, o, g], axis=-1)

    w_ih = reorder_gates(params["w_ih_t"]).astype(bf16)
    w_hh = reorder_gates(params["w_hh_t"]).astype(bf16)
    b_lstm = reorder_gates(params["b_lstm"]).astype(f32)

    # MDN heads: each head padded to its own 128-lane-aligned column group
    w_mdn = jnp.zeros((H, dtot), f32)
    w_mdn = w_mdn.at[:, :K].set(params["wpi_t"])
    w_mdn = w_mdn.at[:, Kp:Kp + KL].set(params["wmu_t"])
    w_mdn = w_mdn.at[:, Kp + KLp:Kp + KLp + KL].set(params["wsig_t"])
    w_mdn = w_mdn.astype(bf16)
    b_mdn = jnp.zeros((1, dtot), f32)
    b_mdn = b_mdn.at[:, :K].set(params["bpi"])
    b_mdn = b_mdn.at[:, Kp:Kp + KL].set(params["bmu"])
    b_mdn = b_mdn.at[:, Kp + KLp:Kp + KLp + KL].set(params["bsig"])

    # ---- time chunking: 8-aligned chunk, pad T instead of requiring divisor --
    Tc = min(_round_up(max(T, 1), 8), 64)
    T_pad = _round_up(T, Tc)
    n_chunks = T_pad // Tc

    x = jnp.concatenate([z, a], axis=-1).astype(bf16)   # [B, T, Din]
    x = jnp.transpose(x, (1, 0, 2))                     # time-major [T, B, Din]
    if T_pad != T:
        x = jnp.pad(x, ((0, T_pad - T), (0, 0), (0, 0)))

    # batch shards: two on shard-able batches so v7x's 2 TensorCores split B
    nb = 2 if (B % 16 == 0) else 1
    Bs = B // nb

    tau32 = jnp.asarray(tau, f32)
    tau_smem = jnp.stack([tau32, 1.0 / tau32, jnp.sqrt(tau32)])

    # ---- VMEM budget (explicit scoped limit, capped for v7x's 64 MiB) --------
    est = (2 * Tc * Bs * Din * 2                          # x (double-buffered)
           + (Din + H) * 4 * H * 2 + 4 * H * 4            # LSTM weights (x1)
           + H * dtot * 2 + dtot * 4                      # MDN weights (x1)
           + 2 * Tc * Bs * (Kp + 2 * KLp) * 4             # outputs (x2)
           + 4 * Bs * H * 4                               # hn/cn (x2)
           + Tc * Bs * 4 * H * 4 + Tc * Bs * H * 2)       # scratch
    vmem_limit = int(min(max(32 * 1024 * 1024, 2 * est), 64 * 1024 * 1024))

    kernel = functools.partial(
        _mdnrnn_kernel, bs=Bs, t_chunk=Tc, in_dim=Din, hidden=H,
        k=K, k_pad=Kp, kl_pad=KLp, seq_len=T, seq_pad=T_pad)

    cw = dict(pipeline_mode=pl.Buffered(1))               # single-buffer weights

    pi_t, mu_t, sig_t, h_n, c_n = pl.pallas_call(
        kernel,
        out_shape=(
            jax.ShapeDtypeStruct((T_pad, B, Kp), f32),
            jax.ShapeDtypeStruct((T_pad, B, KLp), f32),
            jax.ShapeDtypeStruct((T_pad, B, KLp), f32),
            jax.ShapeDtypeStruct((B, H), f32),
            jax.ShapeDtypeStruct((B, H), f32),
        ),
        grid_spec=pltpu.PrefetchScalarGridSpec(
            num_scalar_prefetch=0,
            grid=(nb, n_chunks),
            in_specs=[
                pl.BlockSpec((Tc, Bs, Din), lambda b, cc: (cc, b, 0)),      # x
                pl.BlockSpec((Din, 4 * H), lambda b, cc: (0, 0), **cw),     # W_ih^T
                pl.BlockSpec((H, 4 * H), lambda b, cc: (0, 0), **cw),       # W_hh^T
                pl.BlockSpec((1, 4 * H), lambda b, cc: (0, 0), **cw),       # b_ih+b_hh
                pl.BlockSpec((H, dtot), lambda b, cc: (0, 0), **cw),        # W_mdn
                pl.BlockSpec((1, dtot), lambda b, cc: (0, 0), **cw),        # b_mdn
                pl.BlockSpec(memory_space=pltpu.MemorySpace.SMEM),          # tau
            ],
            out_specs=[
                pl.BlockSpec((Tc, Bs, Kp), lambda b, cc: (cc, b, 0)),       # pi
                pl.BlockSpec((Tc, Bs, KLp), lambda b, cc: (cc, b, 0)),      # mu
                pl.BlockSpec((Tc, Bs, KLp), lambda b, cc: (cc, b, 0)),      # sigma
                pl.BlockSpec((Bs, H), lambda b, cc: (b, 0)),                # h_n
                pl.BlockSpec((Bs, H), lambda b, cc: (b, 0)),                # c_n
            ],
            scratch_shapes=[
                pltpu.VMEM((Tc, Bs, 4 * H), jnp.float32),   # hoisted x@W_ih + b
                pltpu.VMEM((Tc, Bs, H), jnp.bfloat16),      # per-chunk hidden states
            ],
        ),
        compiler_params=pltpu.CompilerParams(
            dimension_semantics=("parallel", "arbitrary"),
            vmem_limit_bytes=vmem_limit),
    )(x, w_ih, w_hh, b_lstm, w_mdn, b_mdn, tau_smem)

    # slice away lane/time padding; back to batch-major (fused single XLA pass)
    pi = jnp.transpose(pi_t[:T, :, :K], (1, 0, 2))
    mu = jnp.transpose(mu_t[:T, :, :KL], (1, 0, 2)).reshape(B, T, K, L)
    sigma = jnp.transpose(sig_t[:T, :, :KL], (1, 0, 2)).reshape(B, T, K, L)
    # h like PyTorch nn.LSTM: (h_n, c_n), each [num_layers=1, B, H]
    return pi, mu, sigma, (h_n[None, :, :], c_n[None, :, :])


# ----------------------------------------------------------------------------
# Parameter init (PyTorch-style uniform(-1/sqrt(H), 1/sqrt(H)), gate order i,f,g,o)
# ----------------------------------------------------------------------------
def init_params(key, latent_dim, action_dim, hidden_dim, num_gaussians):
    Din = latent_dim + action_dim
    H = hidden_dim
    K, L = num_gaussians, latent_dim
    ks = jax.random.split(key, 10)

    def u(k, shape, fan_in):
        bound = 1.0 / jnp.sqrt(jnp.float32(fan_in))
        return jax.random.uniform(k, shape, jnp.float32, -bound, bound)

    return dict(
        # LSTM, pre-transposed [in, 4H], PyTorch gate order (i, f, g, o)
        w_ih_t=u(ks[0], (Din, 4 * H), H),
        w_hh_t=u(ks[1], (H, 4 * H), H),
        b_lstm=u(ks[2], (1, 4 * H), H) + u(ks[3], (1, 4 * H), H),  # b_ih + b_hh
        # MDN heads, pre-transposed [H, out]
        wpi_t=u(ks[4], (H, K), H),
        bpi=u(ks[5], (1, K), H),
        wmu_t=u(ks[6], (H, K * L), H),
        bmu=u(ks[7], (1, K * L), H),
        wsig_t=u(ks[8], (H, K * L), H),
        bsig=u(ks[9], (1, K * L), H),
    )


# ----------------------------------------------------------------------------
# Pure-JAX reference (mirrors the kernel's bf16 MXU operands / f32 accumulation)
# ----------------------------------------------------------------------------
def reference_forward(params, z, a, tau, hidden_dim, num_gaussians, latent_dim):
    bf16 = jnp.bfloat16
    x = jnp.concatenate([z, a], axis=-1)
    B, T, _ = x.shape
    H = hidden_dim
    K, L = num_gaussians, latent_dim

    def dot32(lhs, rhs):
        return jnp.dot(lhs.astype(bf16), rhs.astype(bf16),
                       preferred_element_type=jnp.float32)

    w_ih, w_hh, b = params["w_ih_t"], params["w_hh_t"], params["b_lstm"][0]

    def step(carry, xt):
        h, c = carry
        gates = dot32(xt, w_ih) + dot32(h, w_hh) + b
        i = jax.nn.sigmoid(gates[:, 0 * H:1 * H])
        f = jax.nn.sigmoid(gates[:, 1 * H:2 * H])
        g = jnp.tanh(gates[:, 2 * H:3 * H])
        o = jax.nn.sigmoid(gates[:, 3 * H:4 * H])
        c = f * c + i * g
        h = o * jnp.tanh(c)
        return (h, c), h

    h0 = jnp.zeros((B, H), jnp.float32)
    c0 = jnp.zeros((B, H), jnp.float32)
    (hn, cn), outs = jax.lax.scan(step, (h0, c0), jnp.transpose(x, (1, 0, 2)))
    outs = jnp.transpose(outs, (1, 0, 2))

    tau = jnp.asarray(tau, jnp.float32)
    pi = jax.nn.softmax(
        (dot32(outs, params["wpi_t"]) + params["bpi"][0]) / tau, axis=-1) + 1e-15
    mu = (dot32(outs, params["wmu_t"]) + params["bmu"][0]).reshape(B, T, K, L)
    sigma = (jnp.exp((dot32(outs, params["wsig_t"]) + params["bsig"][0])
                     .reshape(B, T, K, L)) + 1e-15) * jnp.sqrt(tau)
    return pi, mu, sigma, (hn[None], cn[None])


if __name__ == "__main__":
    B, T = 2, 8
    latent_dim, action_dim, hidden_dim, num_gaussians = 32, 4, 32, 5
    tau = 1.0

    key = jax.random.PRNGKey(0)
    kz, ka, kp = jax.random.split(key, 3)
    z = jax.random.normal(kz, (B, T, latent_dim), jnp.float32)
    a = jax.random.normal(ka, (B, T, action_dim), jnp.float32)
    params = init_params(kp, latent_dim, action_dim, hidden_dim, num_gaussians)

    fwd = jax.jit(mdnrnn_forward, static_argnums=(4, 5, 6))
    pi, mu, sigma, (h_n, c_n) = fwd(
        params, z, a, tau, hidden_dim, num_gaussians, latent_dim)
    jax.block_until_ready((pi, mu, sigma, h_n, c_n))

    # silent correctness check against a pure-JAX reference
    pi_r, mu_r, sigma_r, (hn_r, cn_r) = reference_forward(
        params, z, a, tau, hidden_dim, num_gaussians, latent_dim)
    assert pi.shape == (B, T, num_gaussians)
    assert mu.shape == (B, T, num_gaussians, latent_dim)
    assert sigma.shape == (B, T, num_gaussians, latent_dim)
    assert h_n.shape == (1, B, hidden_dim) and c_n.shape == (1, B, hidden_dim)
    # tolerance covers bf16 MXU operands + the approx softmax reciprocal
    for got, ref in ((pi, pi_r), (mu, mu_r), (sigma, sigma_r),
                     (h_n, hn_r), (c_n, cn_r)):
        assert jnp.allclose(got, ref, atol=2e-2, rtol=2e-2), (
            float(jnp.max(jnp.abs(got - ref))))

    print("KERNEL_OK")
</pallas_src>

<mosaic_0001>
module attributes {stable_mosaic.version = 11 : i64} {
  func.func @_mdnrnn_kernel(%arg0: i32, %arg1: i32, %arg2: memref<8x2x36xbf16, #tpu.memory_space<vmem>>, %arg3: memref<36x128xbf16, #tpu.memory_space<vmem>>, %arg4: memref<32x128xbf16, #tpu.memory_space<vmem>>, %arg5: memref<1x128xf32, #tpu.memory_space<vmem>>, %arg6: memref<32x640xbf16, #tpu.memory_space<vmem>>, %arg7: memref<1x640xf32, #tpu.memory_space<vmem>>, %arg8: memref<3xf32, #tpu.memory_space<smem>>, %arg9: memref<8x2x128xf32, #tpu.memory_space<vmem>>, %arg10: memref<8x2x256xf32, #tpu.memory_space<vmem>>, %arg11: memref<8x2x256xf32, #tpu.memory_space<vmem>>, %arg12: memref<2x32xf32, #tpu.memory_space<vmem>>, %arg13: memref<2x32xf32, #tpu.memory_space<vmem>>, %arg14: memref<8x2x128xf32, #tpu.memory_space<vmem>>, %arg15: memref<8x2x32xbf16, #tpu.memory_space<vmem>>) attributes {dimension_semantics = [#tpu.dimension_semantics<parallel>, #tpu.dimension_semantics<arbitrary>], iteration_bounds = array<i64: 1, 1>, scalar_prefetch = 0 : i64, scratch_operands = 2 : i64, tpu.core_type = #tpu.core_type<tc>, window_params = [{transform_indices = @transform_0, window_bounds = array<i64: 8, 2, 36>}, {pipeline_mode = #tpu.pipeline_mode<synchronous>, transform_indices = @transform_1, window_bounds = array<i64: 36, 128>}, {pipeline_mode = #tpu.pipeline_mode<synchronous>, transform_indices = @transform_2, window_bounds = array<i64: 32, 128>}, {pipeline_mode = #tpu.pipeline_mode<synchronous>, transform_indices = @transform_3, window_bounds = array<i64: 1, 128>}, {pipeline_mode = #tpu.pipeline_mode<synchronous>, transform_indices = @transform_4, window_bounds = array<i64: 32, 640>}, {pipeline_mode = #tpu.pipeline_mode<synchronous>, transform_indices = @transform_5, window_bounds = array<i64: 1, 640>}, {transform_indices = @transform_6, window_bounds = array<i64: 3>}, {transform_indices = @transform_7, window_bounds = array<i64: 8, 2, 128>}, {transform_indices = @transform_8, window_bounds = array<i64: 8, 2, 256>}, {transform_indices = @transform_9, window_bounds = array<i64: 8, 2, 256>}, {transform_indices = @transform_10, window_bounds = array<i64: 2, 32>}, {transform_indices = @transform_11, window_bounds = array<i64: 2, 32>}]} {
    %c0_i32 = arith.constant 0 : i32
    %0 = arith.cmpi eq, %arg1, %c0_i32 : i32
    %1 = arith.extui %0 : i1 to i32
    %c0_i32_0 = arith.constant 0 : i32
    %2 = arith.cmpi ne, %1, %c0_i32_0 : i32
    scf.if %2 {
      %cst_92 = arith.constant 0.000000e+00 : f32
      %275 = vector.broadcast %cst_92 : f32 to vector<2x32xf32>
      %c0_93 = arith.constant 0 : index
      %c0_94 = arith.constant 0 : index
      %276 = vector.load %arg12[%c0_93, %c0_94] : memref<2x32xf32, #tpu.memory_space<vmem>>, vector<2x32xf32>
      tpu.vector_store %arg12[%c0_93, %c0_94], %275 {strides = array<i32>} : memref<2x32xf32, #tpu.memory_space<vmem>>, vector<2x32xf32>,
      %cst_95 = arith.constant 0.000000e+00 : f32
      %277 = vector.broadcast %cst_95 : f32 to vector<2x32xf32>
      %c0_96 = arith.constant 0 : index
      %c0_97 = arith.constant 0 : index
      %278 = vector.load %arg13[%c0_96, %c0_97] : memref<2x32xf32, #tpu.memory_space<vmem>>, vector<2x32xf32>
      tpu.vector_store %arg13[%c0_96, %c0_97], %277 {strides = array<i32>} : memref<2x32xf32, #tpu.memory_space<vmem>>, vector<2x32xf32>,
    } else {
    }
    %c0 = arith.constant 0 : index
    %c0_1 = arith.constant 0 : index
    %c0_2 = arith.constant 0 : index
    %3 = vector.load %arg2[%c0, %c0_1, %c0_2] : memref<8x2x36xbf16, #tpu.memory_space<vmem>>, vector<8x2x36xbf16>
    %4 = vector.shape_cast %3 : vector<8x2x36xbf16> to vector<16x36xbf16>
    %c0_3 = arith.constant 0 : index
    %c0_4 = arith.constant 0 : index
    %5 = vector.load %arg3[%c0_3, %c0_4] : memref<36x128xbf16, #tpu.memory_space<vmem>>, vector<36x128xbf16>
    %cst = arith.constant dense<0.000000e+00> : vector<16x128xf32>
    %6 = tpu.matmul %4, %5, %cst {dimension_numbers = #tpu.dot_dimension_numbers<[1], [0], [0], [1], [0, 0, 1, 1], [], []>} : vector<16x36xbf16>, vector<36x128xbf16>, vector<16x128xf32> -> vector<16x128xf32>
    %c0_5 = arith.constant 0 : index
    %c0_6 = arith.constant 0 : index
    %7 = vector.load %arg5[%c0_5, %c0_6] : memref<1x128xf32, #tpu.memory_space<vmem>>, vector<1x128xf32>
    %8 = vector.broadcast %7 : vector<1x128xf32> to vector<16x128xf32>
    %9 = arith.addf %6, %8 : vector<16x128xf32>
    %10 = vector.shape_cast %9 : vector<16x128xf32> to vector<8x2x128xf32>
    %c0_7 = arith.constant 0 : index
    %c0_8 = arith.constant 0 : index
    %c0_9 = arith.constant 0 : index
    %11 = vector.load %arg14[%c0_7, %c0_8, %c0_9] : memref<8x2x128xf32, #tpu.memory_space<vmem>>, vector<8x2x128xf32>
    tpu.vector_store %arg14[%c0_7, %c0_8, %c0_9], %10 {strides = array<i32>} : memref<8x2x128xf32, #tpu.memory_space<vmem>>, vector<8x2x128xf32>,
    %c0_10 = arith.constant 0 : index
    %c0_11 = arith.constant 0 : index
    %12 = vector.load %arg4[%c0_10, %c0_11] : memref<32x128xbf16, #tpu.memory_space<vmem>>, vector<32x128xbf16>
    %c0_12 = arith.constant 0 : index
    %c0_13 = arith.constant 0 : index
    %13 = vector.load %arg12[%c0_12, %c0_13] : memref<2x32xf32, #tpu.memory_space<vmem>>, vector<2x32xf32>
    %c0_14 = arith.constant 0 : index
    %c0_15 = arith.constant 0 : index
    %14 = vector.load %arg13[%c0_14, %c0_15] : memref<2x32xf32, #tpu.memory_space<vmem>>, vector<2x32xf32>
    %c0_i32_16 = arith.constant 0 : i32
    %15 = arith.index_cast %c0_i32_16 : i32 to index
    %c0_17 = arith.constant 0 : index
    %c0_18 = arith.constant 0 : index
    %16 = vector.load %arg14[%15, %c0_17, %c0_18] : memref<8x2x128xf32, #tpu.memory_space<vmem>>, vector<1x2x128xf32>
    %17 = vector.shape_cast %16 : vector<1x2x128xf32> to vector<2x128xf32>
    %18 = arith.truncf %13 : vector<2x32xf32> to vector<2x32xbf16>
    %cst_19 = arith.constant dense<0.000000e+00> : vector<2x128xf32>
    %19 = tpu.matmul %18, %12, %cst_19 {dimension_numbers = #tpu.dot_dimension_numbers<[1], [0], [0], [1], [0, 0, 1, 1], [], []>} : vector<2x32xbf16>, vector<32x128xbf16>, vector<2x128xf32> -> vector<2x128xf32>
    %20 = arith.addf %17, %19 : vector<2x128xf32>
    %21 = vector.extract_strided_slice %20 {offsets = [0, 0], sizes = [2, 96], strides = [1, 1]} : vector<2x128xf32> to vector<2x96xf32>
    %22 = arith.negf %21 : vector<2x96xf32>
    %23 = math.exp %22 : vector<2x96xf32>
    %cst_20 = arith.constant 1.000000e+00 : f32
    %24 = vector.broadcast %cst_20 : f32 to vector<2x96xf32>
    %25 = arith.addf %24, %23 : vector<2x96xf32>
    %26 = arith.divf %24, %25 : vector<2x96xf32>
    %27 = vector.extract_strided_slice %20 {offsets = [0, 96], sizes = [2, 32], strides = [1, 1]} : vector<2x128xf32> to vector<2x32xf32>
    %28 = math.tanh %27 : vector<2x32xf32>
    %29 = vector.extract_strided_slice %26 {offsets = [0, 0], sizes = [2, 32], strides = [1, 1]} : vector<2x96xf32> to vector<2x32xf32>
    %30 = vector.extract_strided_slice %26 {offsets = [0, 32], sizes = [2, 32], strides = [1, 1]} : vector<2x96xf32> to vector<2x32xf32>
    %31 = vector.extract_strided_slice %26 {offsets = [0, 64], sizes = [2, 32], strides = [1, 1]} : vector<2x96xf32> to vector<2x32xf32>
    %32 = arith.mulf %30, %14 : vector<2x32xf32>
    %33 = arith.mulf %29, %28 : vector<2x32xf32>
    %34 = arith.addf %32, %33 : vector<2x32xf32>
    %35 = math.tanh %34 : vector<2x32xf32>
    %36 = arith.mulf %31, %35 : vector<2x32xf32>
    %37 = arith.truncf %36 : vector<2x32xf32> to vector<2x32xbf16>
    %38 = arith.index_cast %c0_i32_16 : i32 to index
    %c0_21 = arith.constant 0 : index
    %c0_22 = arith.constant 0 : index
    %39 = vector.load %arg15[%38, %c0_21, %c0_22] : memref<8x2x32xbf16, #tpu.memory_space<vmem>>, vector<1x2x32xbf16>
    %40 = vector.shape_cast %39 : vector<1x2x32xbf16> to vector<2x32xbf16>
    %41 = vector.shape_cast %37 : vector<2x32xbf16> to vector<1x2x32xbf16>
    tpu.vector_store %arg15[%38, %c0_21, %c0_22], %41 {strides = array<i32>} : memref<8x2x32xbf16, #tpu.memory_space<vmem>>, vector<1x2x32xbf16>,
    %c1_i32 = arith.constant 1 : i32
    %42 = arith.index_cast %c1_i32 : i32 to index
    %c0_23 = arith.constant 0 : index
    %c0_24 = arith.constant 0 : index
    %43 = vector.load %arg14[%42, %c0_23, %c0_24] : memref<8x2x128xf32, #tpu.memory_space<vmem>>, vector<1x2x128xf32>
    %44 = vector.shape_cast %43 : vector<1x2x128xf32> to vector<2x128xf32>
    %45 = arith.truncf %36 : vector<2x32xf32> to vector<2x32xbf16>
    %cst_25 = arith.constant dense<0.000000e+00> : vector<2x128xf32>
    %46 = tpu.matmul %45, %12, %cst_25 {dimension_numbers = #tpu.dot_dimension_numbers<[1], [0], [0], [1], [0, 0, 1, 1], [], []>} : vector<2x32xbf16>, vector<32x128xbf16>, vector<2x128xf32> -> vector<2x128xf32>
    %47 = arith.addf %44, %46 : vector<2x128xf32>
    %48 = vector.extract_strided_slice %47 {offsets = [0, 0], sizes = [2, 96], strides = [1, 1]} : vector<2x128xf32> to vector<2x96xf32>
    %49 = arith.negf %48 : vector<2x96xf32>
    %50 = math.exp %49 : vector<2x96xf32>
    %cst_26 = arith.constant 1.000000e+00 : f32
    %51 = vector.broadcast %cst_26 : f32 to vector<2x96xf32>
    %52 = arith.addf %51, %50 : vector<2x96xf32>
    %53 = arith.divf %51, %52 : vector<2x96xf32>
    %54 = vector.extract_strided_slice %47 {offsets = [0, 96], sizes = [2, 32], strides = [1, 1]} : vector<2x128xf32> to vector<2x32xf32>
    %55 = math.tanh %54 : vector<2x32xf32>
    %56 = vector.extract_strided_slice %53 {offsets = [0, 0], sizes = [2, 32], strides = [1, 1]} : vector<2x96xf32> to vector<2x32xf32>
    %57 = vector.extract_strided_slice %53 {offsets = [0, 32], sizes = [2, 32], strides = [1, 1]} : vector<2x96xf32> to vector<2x32xf32>
    %58 = vector.extract_strided_slice %53 {offsets = [0, 64], sizes = [2, 32], strides = [1, 1]} : vector<2x96xf32> to vector<2x32xf32>
    %59 = arith.mulf %57, %34 : vector<2x32xf32>
    %60 = arith.mulf %56, %55 : vector<2x32xf32>
    %61 = arith.addf %59, %60 : vector<2x32xf32>
    %62 = math.tanh %61 : vector<2x32xf32>
    %63 = arith.mulf %58, %62 : vector<2x32xf32>
    %64 = arith.truncf %63 : vector<2x32xf32> to vector<2x32xbf16>
    %65 = arith.index_cast %c1_i32 : i32 to index
    %c0_27 = arith.constant 0 : index
    %c0_28 = arith.constant 0 : index
    %66 = vector.load %arg15[%65, %c0_27, %c0_28] : memref<8x2x32xbf16, #tpu.memory_space<vmem>>, vector<1x2x32xbf16>
    %67 = vector.shape_cast %66 : vector<1x2x32xbf16> to vector<2x32xbf16>
    %68 = vector.shape_cast %64 : vector<2x32xbf16> to vector<1x2x32xbf16>
    tpu.vector_store %arg15[%65, %c0_27, %c0_28], %68 {strides = array<i32>} : memref<8x2x32xbf16, #tpu.memory_space<vmem>>, vector<1x2x32xbf16>,
    %c2_i32 = arith.constant 2 : i32
    %69 = arith.index_cast %c2_i32 : i32 to index
    %c0_29 = arith.constant 0 : index
    %c0_30 = arith.constant 0 : index
    %70 = vector.load %arg14[%69, %c0_29, %c0_30] : memref<8x2x128xf32, #tpu.memory_space<vmem>>, vector<1x2x128xf32>
    %71 = vector.shape_cast %70 : vector<1x2x128xf32> to vector<2x128xf32>
    %72 = arith.truncf %63 : vector<2x32xf32> to vector<2x32xbf16>
    %cst_31 = arith.constant dense<0.000000e+00> : vector<2x128xf32>
    %73 = tpu.matmul %72, %12, %cst_31 {dimension_numbers = #tpu.dot_dimension_numbers<[1], [0], [0], [1], [0, 0, 1, 1], [], []>} : vector<2x32xbf16>, vector<32x128xbf16>, vector<2x128xf32> -> vector<2x128xf32>
    %74 = arith.addf %71, %73 : vector<2x128xf32>
    %75 = vector.extract_strided_slice %74 {offsets = [0, 0], sizes = [2, 96], strides = [1, 1]} : vector<2x128xf32> to vector<2x96xf32>
    %76 = arith.negf %75 : vector<2x96xf32>
    %77 = math.exp %76 : vector<2x96xf32>
    %cst_32 = arith.constant 1.000000e+00 : f32
    %78 = vector.broadcast %cst_32 : f32 to vector<2x96xf32>
    %79 = arith.addf %78, %77 : vector<2x96xf32>
    %80 = arith.divf %78, %79 : vector<2x96xf32>
    %81 = vector.extract_strided_slice %74 {offsets = [0, 96], sizes = [2, 32], strides = [1, 1]} : vector<2x128xf32> to vector<2x32xf32>
    %82 = math.tanh %81 : vector<2x32xf32>
    %83 = vector.extract_strided_slice %80 {offsets = [0, 0], sizes = [2, 32], strides = [1, 1]} : vector<2x96xf32> to vector<2x32xf32>
    %84 = vector.extract_strided_slice %80 {offsets = [0, 32], sizes = [2, 32], strides = [1, 1]} : vector<2x96xf32> to vector<2x32xf32>
    %85 = vector.extract_strided_slice %80 {offsets = [0, 64], sizes = [2, 32], strides = [1, 1]} : vector<2x96xf32> to vector<2x32xf32>
    %86 = arith.mulf %84, %61 : vector<2x32xf32>
    %87 = arith.mulf %83, %82 : vector<2x32xf32>
    %88 = arith.addf %86, %87 : vector<2x32xf32>
    %89 = math.tanh %88 : vector<2x32xf32>
    %90 = arith.mulf %85, %89 : vector<2x32xf32>
    %91 = arith.truncf %90 : vector<2x32xf32> to vector<2x32xbf16>
    %92 = arith.index_cast %c2_i32 : i32 to index
    %c0_33 = arith.constant 0 : index
    %c0_34 = arith.constant 0 : index
    %93 = vector.load %arg15[%92, %c0_33, %c0_34] : memref<8x2x32xbf16, #tpu.memory_space<vmem>>, vector<1x2x32xbf16>
    %94 = vector.shape_cast %93 : vector<1x2x32xbf16> to vector<2x32xbf16>
    %95 = vector.shape_cast %91 : vector<2x32xbf16> to vector<1x2x32xbf16>
    tpu.vector_store %arg15[%92, %c0_33, %c0_34], %95 {strides = array<i32>} : memref<8x2x32xbf16, #tpu.memory_space<vmem>>, vector<1x2x32xbf16>,
    %c3_i32 = arith.constant 3 : i32
    %96 = arith.index_cast %c3_i32 : i32 to index
    %c0_35 = arith.constant 0 : index
    %c0_36 = arith.constant 0 : index
    %97 = vector.load %arg14[%96, %c0_35, %c0_36] : memref<8x2x128xf32, #tpu.memory_space<vmem>>, vector<1x2x128xf32>
    %98 = vector.shape_cast %97 : vector<1x2x128xf32> to vector<2x128xf32>
    %99 = arith.truncf %90 : vector<2x32xf32> to vector<2x32xbf16>
    %cst_37 = arith.constant dense<0.000000e+00> : vector<2x128xf32>
    %100 = tpu.matmul %99, %12, %cst_37 {dimension_numbers = #tpu.dot_dimension_numbers<[1], [0], [0], [1], [0, 0, 1, 1], [], []>} : vector<2x32xbf16>, vector<32x128xbf16>, vector<2x128xf32> -> vector<2x128xf32>
    %101 = arith.addf %98, %100 : vector<2x128xf32>
    %102 = vector.extract_strided_slice %101 {offsets = [0, 0], sizes = [2, 96], strides = [1, 1]} : vector<2x128xf32> to vector<2x96xf32>
    %103 = arith.negf %102 : vector<2x96xf32>
    %104 = math.exp %103 : vector<2x96xf32>
    %cst_38 = arith.constant 1.000000e+00 : f32
    %105 = vector.broadcast %cst_38 : f32 to vector<2x96xf32>
    %106 = arith.addf %105, %104 : vector<2x96xf32>
    %107 = arith.divf %105, %106 : vector<2x96xf32>
    %108 = vector.extract_strided_slice %101 {offsets = [0, 96], sizes = [2, 32], strides = [1, 1]} : vector<2x128xf32> to vector<2x32xf32>
    %109 = math.tanh %108 : vector<2x32xf32>
    %110 = vector.extract_strided_slice %107 {offsets = [0, 0], sizes = [2, 32], strides = [1, 1]} : vector<2x96xf32> to vector<2x32xf32>
    %111 = vector.extract_strided_slice %107 {offsets = [0, 32], sizes = [2, 32], strides = [1, 1]} : vector<2x96xf32> to vector<2x32xf32>
    %112 = vector.extract_strided_slice %107 {offsets = [0, 64], sizes = [2, 32], strides = [1, 1]} : vector<2x96xf32> to vector<2x32xf32>
    %113 = arith.mulf %111, %88 : vector<2x32xf32>
    %114 = arith.mulf %110, %109 : vector<2x32xf32>
    %115 = arith.addf %113, %114 : vector<2x32xf32>
    %116 = math.tanh %115 : vector<2x32xf32>
    %117 = arith.mulf %112, %116 : vector<2x32xf32>
    %118 = arith.truncf %117 : vector<2x32xf32> to vector<2x32xbf16>
    %119 = arith.index_cast %c3_i32 : i32 to index
    %c0_39 = arith.constant 0 : index
    %c0_40 = arith.constant 0 : index
    %120 = vector.load %arg15[%119, %c0_39, %c0_40] : memref<8x2x32xbf16, #tpu.memory_space<vmem>>, vector<1x2x32xbf16>
    %121 = vector.shape_cast %120 : vector<1x2x32xbf16> to vector<2x32xbf16>
    %122 = vector.shape_cast %118 : vector<2x32xbf16> to vector<1x2x32xbf16>
    tpu.vector_store %arg15[%119, %c0_39, %c0_40], %122 {strides = array<i32>} : memref<8x2x32xbf16, #tpu.memory_space<vmem>>, vector<1x2x32xbf16>,
    %c4_i32 = arith.constant 4 : i32
    %123 = arith.index_cast %c4_i32 : i32 to index
    %c0_41 = arith.constant 0 : index
    %c0_42 = arith.constant 0 : index
    %124 = vector.load %arg14[%123, %c0_41, %c0_42] : memref<8x2x128xf32, #tpu.memory_space<vmem>>, vector<1x2x128xf32>
    %125 = vector.shape_cast %124 : vector<1x2x128xf32> to vector<2x128xf32>
    %126 = arith.truncf %117 : vector<2x32xf32> to vector<2x32xbf16>
    %cst_43 = arith.constant dense<0.000000e+00> : vector<2x128xf32>
    %127 = tpu.matmul %126, %12, %cst_43 {dimension_numbers = #tpu.dot_dimension_numbers<[1], [0], [0], [1], [0, 0, 1, 1], [], []>} : vector<2x32xbf16>, vector<32x128xbf16>, vector<2x128xf32> -> vector<2x128xf32>
    %128 = arith.addf %125, %127 : vector<2x128xf32>
    %129 = vector.extract_strided_slice %128 {offsets = [0, 0], sizes = [2, 96], strides = [1, 1]} : vector<2x128xf32> to vector<2x96xf32>
    %130 = arith.negf %129 : vector<2x96xf32>
    %131 = math.exp %130 : vector<2x96xf32>
    %cst_44 = arith.constant 1.000000e+00 : f32
    %132 = vector.broadcast %cst_44 : f32 to vector<2x96xf32>
    %133 = arith.addf %132, %131 : vector<2x96xf32>
    %134 = arith.divf %132, %133 : vector<2x96xf32>
    %135 = vector.extract_strided_slice %128 {offsets = [0, 96], sizes = [2, 32], strides = [1, 1]} : vector<2x128xf32> to vector<2x32xf32>
    %136 = math.tanh %135 : vector<2x32xf32>
    %137 = vector.extract_strided_slice %134 {offsets = [0, 0], sizes = [2, 32], strides = [1, 1]} : vector<2x96xf32> to vector<2x32xf32>
    %138 = vector.extract_strided_slice %134 {offsets = [0, 32], sizes = [2, 32], strides = [1, 1]} : vector<2x96xf32> to vector<2x32xf32>
    %139 = vector.extract_strided_slice %134 {offsets = [0, 64], sizes = [2, 32], strides = [1, 1]} : vector<2x96xf32> to vector<2x32xf32>
    %140 = arith.mulf %138, %115 : vector<2x32xf32>
    %141 = arith.mulf %137, %136 : vector<2x32xf32>
    %142 = arith.addf %140, %141 : vector<2x32xf32>
    %143 = math.tanh %142 : vector<2x32xf32>
    %144 = arith.mulf %139, %143 : vector<2x32xf32>
    %145 = arith.truncf %144 : vector<2x32xf32> to vector<2x32xbf16>
    %146 = arith.index_cast %c4_i32 : i32 to index
    %c0_45 = arith.constant 0 : index
    %c0_46 = arith.constant 0 : index
    %147 = vector.load %arg15[%146, %c0_45, %c0_46] : memref<8x2x32xbf16, #tpu.memory_space<vmem>>, vector<1x2x32xbf16>
    %148 = vector.shape_cast %147 : vector<1x2x32xbf16> to vector<2x32xbf16>
    %149 = vector.shape_cast %145 : vector<2x32xbf16> to vector<1x2x32xbf16>
    tpu.vector_store %arg15[%146, %c0_45, %c0_46], %149 {strides = array<i32>} : memref<8x2x32xbf16, #tpu.memory_space<vmem>>, vector<1x2x32xbf16>,
    %c5_i32 = arith.constant 5 : i32
    %150 = arith.index_cast %c5_i32 : i32 to index
    %c0_47 = arith.constant 0 : index
    %c0_48 = arith.constant 0 : index
    %151 = vector.load %arg14[%150, %c0_47, %c0_48] : memref<8x2x128xf32, #tpu.memory_space<vmem>>, vector<1x2x128xf32>
    %152 = vector.shape_cast %151 : vector<1x2x128xf32> to vector<2x128xf32>
    %153 = arith.truncf %144 : vector<2x32xf32> to vector<2x32xbf16>
    %cst_49 = arith.constant dense<0.000000e+00> : vector<2x128xf32>
    %154 = tpu.matmul %153, %12, %cst_49 {dimension_numbers = #tpu.dot_dimension_numbers<[1], [0], [0], [1], [0, 0, 1, 1], [], []>} : vector<2x32xbf16>, vector<32x128xbf16>, vector<2x128xf32> -> vector<2x128xf32>
    %155 = arith.addf %152, %154 : vector<2x128xf32>
    %156 = vector.extract_strided_slice %155 {offsets = [0, 0], sizes = [2, 96], strides = [1, 1]} : vector<2x128xf32> to vector<2x96xf32>
    %157 = arith.negf %156 : vector<2x96xf32>
    %158 = math.exp %157 : vector<2x96xf32>
    %cst_50 = arith.constant 1.000000e+00 : f32
    %159 = vector.broadcast %cst_50 : f32 to vector<2x96xf32>
    %160 = arith.addf %159, %158 : vector<2x96xf32>
    %161 = arith.divf %159, %160 : vector<2x96xf32>
    %162 = vector.extract_strided_slice %155 {offsets = [0, 96], sizes = [2, 32], strides = [1, 1]} : vector<2x128xf32> to vector<2x32xf32>
    %163 = math.tanh %162 : vector<2x32xf32>
    %164 = vector.extract_strided_slice %161 {offsets = [0, 0], sizes = [2, 32], strides = [1, 1]} : vector<2x96xf32> to vector<2x32xf32>
    %165 = vector.extract_strided_slice %161 {offsets = [0, 32], sizes = [2, 32], strides = [1, 1]} : vector<2x96xf32> to vector<2x32xf32>
    %166 = vector.extract_strided_slice %161 {offsets = [0, 64], sizes = [2, 32], strides = [1, 1]} : vector<2x96xf32> to vector<2x32xf32>
    %167 = arith.mulf %165, %142 : vector<2x32xf32>
    %168 = arith.mulf %164, %163 : vector<2x32xf32>
    %169 = arith.addf %167, %168 : vector<2x32xf32>
    %170 = math.tanh %169 : vector<2x32xf32>
    %171 = arith.mulf %166, %170 : vector<2x32xf32>
    %172 = arith.truncf %171 : vector<2x32xf32> to vector<2x32xbf16>
    %173 = arith.index_cast %c5_i32 : i32 to index
    %c0_51 = arith.constant 0 : index
    %c0_52 = arith.constant 0 : index
    %174 = vector.load %arg15[%173, %c0_51, %c0_52] : memref<8x2x32xbf16, #tpu.memory_space<vmem>>, vector<1x2x32xbf16>
    %175 = vector.shape_cast %174 : vector<1x2x32xbf16> to vector<2x32xbf16>
    %176 = vector.shape_cast %172 : vector<2x32xbf16> to vector<1x2x32xbf16>
    tpu.vector_store %arg15[%173, %c0_51, %c0_52], %176 {strides = array<i32>} : memref<8x2x32xbf16, #tpu.memory_space<vmem>>, vector<1x2x32xbf16>,
    %c6_i32 = arith.constant 6 : i32
    %177 = arith.index_cast %c6_i32 : i32 to index
    %c0_53 = arith.constant 0 : index
    %c0_54 = arith.constant 0 : index
    %178 = vector.load %arg14[%177, %c0_53, %c0_54] : memref<8x2x128xf32, #tpu.memory_space<vmem>>, vector<1x2x128xf32>
    %179 = vector.shape_cast %178 : vector<1x2x128xf32> to vector<2x128xf32>
    %180 = arith.truncf %171 : vector<2x32xf32> to vector<2x32xbf16>
    %cst_55 = arith.constant dense<0.000000e+00> : vector<2x128xf32>
    %181 = tpu.matmul %180, %12, %cst_55 {dimension_numbers = #tpu.dot_dimension_numbers<[1], [0], [0], [1], [0, 0, 1, 1], [], []>} : vector<2x32xbf16>, vector<32x128xbf16>, vector<2x128xf32> -> vector<2x128xf32>
    %182 = arith.addf %179, %181 : vector<2x128xf32>
    %183 = vector.extract_strided_slice %182 {offsets = [0, 0], sizes = [2, 96], strides = [1, 1]} : vector<2x128xf32> to vector<2x96xf32>
    %184 = arith.negf %183 : vector<2x96xf32>
    %185 = math.exp %184 : vector<2x96xf32>
    %cst_56 = arith.constant 1.000000e+00 : f32
    %186 = vector.broadcast %cst_56 : f32 to vector<2x96xf32>
    %187 = arith.addf %186, %185 : vector<2x96xf32>
    %188 = arith.divf %186, %187 : vector<2x96xf32>
    %189 = vector.extract_strided_slice %182 {offsets = [0, 96], sizes = [2, 32], strides = [1, 1]} : vector<2x128xf32> to vector<2x32xf32>
    %190 = math.tanh %189 : vector<2x32xf32>
    %191 = vector.extract_strided_slice %188 {offsets = [0, 0], sizes = [2, 32], strides = [1, 1]} : vector<2x96xf32> to vector<2x32xf32>
    %192 = vector.extract_strided_slice %188 {offsets = [0, 32], sizes = [2, 32], strides = [1, 1]} : vector<2x96xf32> to vector<2x32xf32>
    %193 = vector.extract_strided_slice %188 {offsets = [0, 64], sizes = [2, 32], strides = [1, 1]} : vector<2x96xf32> to vector<2x32xf32>
    %194 = arith.mulf %192, %169 : vector<2x32xf32>
    %195 = arith.mulf %191, %190 : vector<2x32xf32>
    %196 = arith.addf %194, %195 : vector<2x32xf32>
    %197 = math.tanh %196 : vector<2x32xf32>
    %198 = arith.mulf %193, %197 : vector<2x32xf32>
    %199 = arith.truncf %198 : vector<2x32xf32> to vector<2x32xbf16>
    %200 = arith.index_cast %c6_i32 : i32 to index
    %c0_57 = arith.constant 0 : index
    %c0_58 = arith.constant 0 : index
    %201 = vector.load %arg15[%200, %c0_57, %c0_58] : memref<8x2x32xbf16, #tpu.memory_space<vmem>>, vector<1x2x32xbf16>
    %202 = vector.shape_cast %201 : vector<1x2x32xbf16> to vector<2x32xbf16>
    %203 = vector.shape_cast %199 : vector<2x32xbf16> to vector<1x2x32xbf16>
    tpu.vector_store %arg15[%200, %c0_57, %c0_58], %203 {strides = array<i32>} : memref<8x2x32xbf16, #tpu.memory_space<vmem>>, vector<1x2x32xbf16>,
    %c7_i32 = arith.constant 7 : i32
    %204 = arith.index_cast %c7_i32 : i32 to index
    %c0_59 = arith.constant 0 : index
    %c0_60 = arith.constant 0 : index
    %205 = vector.load %arg14[%204, %c0_59, %c0_60] : memref<8x2x128xf32, #tpu.memory_space<vmem>>, vector<1x2x128xf32>
    %206 = vector.shape_cast %205 : vector<1x2x128xf32> to vector<2x128xf32>
    %207 = arith.truncf %198 : vector<2x32xf32> to vector<2x32xbf16>
    %cst_61 = arith.constant dense<0.000000e+00> : vector<2x128xf32>
    %208 = tpu.matmul %207, %12, %cst_61 {dimension_numbers = #tpu.dot_dimension_numbers<[1], [0], [0], [1], [0, 0, 1, 1], [], []>} : vector<2x32xbf16>, vector<32x128xbf16>, vector<2x128xf32> -> vector<2x128xf32>
    %209 = arith.addf %206, %208 : vector<2x128xf32>
    %210 = vector.extract_strided_slice %209 {offsets = [0, 0], sizes = [2, 96], strides = [1, 1]} : vector<2x128xf32> to vector<2x96xf32>
    %211 = arith.negf %210 : vector<2x96xf32>
    %212 = math.exp %211 : vector<2x96xf32>
    %cst_62 = arith.constant 1.000000e+00 : f32
    %213 = vector.broadcast %cst_62 : f32 to vector<2x96xf32>
    %214 = arith.addf %213, %212 : vector<2x96xf32>
    %215 = arith.divf %213, %214 : vector<2x96xf32>
    %216 = vector.extract_strided_slice %209 {offsets = [0, 96], sizes = [2, 32], strides = [1, 1]} : vector<2x128xf32> to vector<2x32xf32>
    %217 = math.tanh %216 : vector<2x32xf32>
    %218 = vector.extract_strided_slice %215 {offsets = [0, 0], sizes = [2, 32], strides = [1, 1]} : vector<2x96xf32> to vector<2x32xf32>
    %219 = vector.extract_strided_slice %215 {offsets = [0, 32], sizes = [2, 32], strides = [1, 1]} : vector<2x96xf32> to vector<2x32xf32>
    %220 = vector.extract_strided_slice %215 {offsets = [0, 64], sizes = [2, 32], strides = [1, 1]} : vector<2x96xf32> to vector<2x32xf32>
    %221 = arith.mulf %219, %196 : vector<2x32xf32>
    %222 = arith.mulf %218, %217 : vector<2x32xf32>
    %223 = arith.addf %221, %222 : vector<2x32xf32>
    %224 = math.tanh %223 : vector<2x32xf32>
    %225 = arith.mulf %220, %224 : vector<2x32xf32>
    %226 = arith.truncf %225 : vector<2x32xf32> to vector<2x32xbf16>
    %227 = arith.index_cast %c7_i32 : i32 to index
    %c0_63 = arith.constant 0 : index
    %c0_64 = arith.constant 0 : index
    %228 = vector.load %arg15[%227, %c0_63, %c0_64] : memref<8x2x32xbf16, #tpu.memory_space<vmem>>, vector<1x2x32xbf16>
    %229 = vector.shape_cast %228 : vector<1x2x32xbf16> to vector<2x32xbf16>
    %230 = vector.shape_cast %226 : vector<2x32xbf16> to vector<1x2x32xbf16>
    tpu.vector_store %arg15[%227, %c0_63, %c0_64], %230 {strides = array<i32>} : memref<8x2x32xbf16, #tpu.memory_space<vmem>>, vector<1x2x32xbf16>,
    %c8_i32 = arith.constant 8 : i32
    %c0_65 = arith.constant 0 : index
    %c0_66 = arith.constant 0 : index
    %231 = vector.load %arg12[%c0_65, %c0_66] : memref<2x32xf32, #tpu.memory_space<vmem>>, vector<2x32xf32>
    tpu.vector_store %arg12[%c0_65, %c0_66], %225 {strides = array<i32>} : memref<2x32xf32, #tpu.memory_space<vmem>>, vector<2x32xf32>,
    %c0_67 = arith.constant 0 : index
    %c0_68 = arith.constant 0 : index
    %232 = vector.load %arg13[%c0_67, %c0_68] : memref<2x32xf32, #tpu.memory_space<vmem>>, vector<2x32xf32>
    tpu.vector_store %arg13[%c0_67, %c0_68], %223 {strides = array<i32>} : memref<2x32xf32, #tpu.memory_space<vmem>>, vector<2x32xf32>,
    %c0_69 = arith.constant 0 : index
    %c0_70 = arith.constant 0 : index
    %c0_71 = arith.constant 0 : index
    %233 = vector.load %arg15[%c0_69, %c0_70, %c0_71] : memref<8x2x32xbf16, #tpu.memory_space<vmem>>, vector<8x2x32xbf16>
    %234 = vector.shape_cast %233 : vector<8x2x32xbf16> to vector<16x32xbf16>
    %c0_72 = arith.constant 0 : index
    %c0_73 = arith.constant 0 : index
    %235 = vector.load %arg6[%c0_72, %c0_73] : memref<32x640xbf16, #tpu.memory_space<vmem>>, vector<32x640xbf16>
    %cst_74 = arith.constant dense<0.000000e+00> : vector<16x640xf32>
    %236 = tpu.matmul %234, %235, %cst_74 {dimension_numbers = #tpu.dot_dimension_numbers<[1], [0], [0], [1], [0, 0, 1, 1], [], []>} : vector<16x32xbf16>, vector<32x640xbf16>, vector<16x640xf32> -> vector<16x640xf32>
    %c0_75 = arith.constant 0 : index
    %c0_76 = arith.constant 0 : index
    %237 = vector.load %arg7[%c0_75, %c0_76] : memref<1x640xf32, #tpu.memory_space<vmem>>, vector<1x640xf32>
    %238 = vector.broadcast %237 : vector<1x640xf32> to vector<16x640xf32>
    %239 = arith.addf %236, %238 : vector<16x640xf32>
    %c1 = arith.constant 1 : index
    %240 = memref.load %arg8[%c1] : memref<3xf32, #tpu.memory_space<smem>>
    %c2 = arith.constant 2 : index
    %241 = memref.load %arg8[%c2] : memref<3xf32, #tpu.memory_space<smem>>
    %242 = vector.extract_strided_slice %239 {offsets = [0, 0], sizes = [16, 128], strides = [1, 1]} : vector<16x640xf32> to vector<16x128xf32>
    %243 = vector.broadcast %240 : f32 to vector<16x128xf32>
    %244 = arith.mulf %242, %243 : vector<16x128xf32>
    %245 = tpu.iota {dimensions = array<i32: 1>} : vector<16x128xi32>
    %c5_i32_77 = arith.constant 5 : i32
    %246 = vector.broadcast %c5_i32_77 : i32 to vector<16x128xi32>
    %247 = arith.cmpi slt, %245, %246 : vector<16x128xi32>
    %cst_78 = arith.constant -1.000000e+30 : f32
    %248 = vector.broadcast %cst_78 : f32 to vector<16x128xf32>
    %249 = arith.select %247, %244, %248 : vector<16x128xi1>, vector<16x128xf32>
    %cst_79 = arith.constant dense<0xFF800000> : vector<16xf32>
    %250 = vector.multi_reduction <maximumf>, %249, %cst_79 [1] : vector<16x128xf32> to vector<16xf32>
    %251 = vector.shape_cast %250 : vector<16xf32> to vector<16x1xf32>
    %252 = vector.broadcast %251 : vector<16x1xf32> to vector<16x128xf32>
    %253 = arith.subf %249, %252 : vector<16x128xf32>
    %254 = math.exp %253 : vector<16x128xf32>
    %cst_80 = arith.constant dense<0.000000e+00> : vector<16xf32>
    %255 = vector.multi_reduction <add>, %254, %cst_80 [1] : vector<16x128xf32> to vector<16xf32>
    %256 = vector.shape_cast %255 : vector<16xf32> to vector<16x1xf32>
    %257 = tpu.reciprocal %256 {approx = true} : vector<16x1xf32> -> vector<16x1xf32>
    %258 = vector.broadcast %257 : vector<16x1xf32> to vector<16x128xf32>
    %259 = arith.mulf %254, %258 : vector<16x128xf32>
    %cst_81 = arith.constant 1.000000e-15 : f32
    %260 = vector.broadcast %cst_81 : f32 to vector<16x128xf32>
    %261 = arith.addf %259, %260 : vector<16x128xf32>
    %262 = vector.shape_cast %261 : vector<16x128xf32> to vector<8x2x128xf32>
    %c0_82 = arith.constant 0 : index
    %c0_83 = arith.constant 0 : index
    %c0_84 = arith.constant 0 : index
    %263 = vector.load %arg9[%c0_82, %c0_83, %c0_84] : memref<8x2x128xf32, #tpu.memory_space<vmem>>, vector<8x2x128xf32>
    tpu.vector_store %arg9[%c0_82, %c0_83, %c0_84], %262 {strides = array<i32>} : memref<8x2x128xf32, #tpu.memory_space<vmem>>, vector<8x2x128xf32>,
    %264 = vector.extract_strided_slice %239 {offsets = [0, 128], sizes = [16, 256], strides = [1, 1]} : vector<16x640xf32> to vector<16x256xf32>
    %265 = vector.shape_cast %264 : vector<16x256xf32> to vector<8x2x256xf32>
    %c0_85 = arith.constant 0 : index
    %c0_86 = arith.constant 0 : index
    %c0_87 = arith.constant 0 : index
    %266 = vector.load %arg10[%c0_85, %c0_86, %c0_87] : memref<8x2x256xf32, #tpu.memory_space<vmem>>, vector<8x2x256xf32>
    tpu.vector_store %arg10[%c0_85, %c0_86, %c0_87], %265 {strides = array<i32>} : memref<8x2x256xf32, #tpu.memory_space<vmem>>, vector<8x2x256xf32>,
    %267 = vector.extract_strided_slice %239 {offsets = [0, 384], sizes = [16, 256], strides = [1, 1]} : vector<16x640xf32> to vector<16x256xf32>
    %268 = math.exp %267 : vector<16x256xf32>
    %cst_88 = arith.constant 1.000000e-15 : f32
    %269 = vector.broadcast %cst_88 : f32 to vector<16x256xf32>
    %270 = arith.addf %268, %269 : vector<16x256xf32>
    %271 = vector.broadcast %241 : f32 to vector<16x256xf32>
    %272 = arith.mulf %270, %271 : vector<16x256xf32>
    %273 = vector.shape_cast %272 : vector<16x256xf32> to vector<8x2x256xf32>
    %c0_89 = arith.constant 0 : index
    %c0_90 = arith.constant 0 : index
    %c0_91 = arith.constant 0 : index
    %274 = vector.load %arg11[%c0_89, %c0_90, %c0_91] : memref<8x2x256xf32, #tpu.memory_space<vmem>>, vector<8x2x256xf32>
    tpu.vector_store %arg11[%c0_89, %c0_90, %c0_91], %273 {strides = array<i32>} : memref<8x2x256xf32, #tpu.memory_space<vmem>>, vector<8x2x256xf32>,
    return
  }
  func.func @transform_0(%arg0: i32, %arg1: i32) -> (i32, i32, i32) {
    %c0_i32 = arith.constant 0 : i32
    %c0_i32_0 = arith.constant 0 : i32
    return %arg1, %arg0, %c0_i32 : i32, i32, i32
  }
  func.func @transform_1(%arg0: i32, %arg1: i32) -> (i32, i32) {
    %c0_i32 = arith.constant 0 : i32
    %c0_i32_0 = arith.constant 0 : i32
    %c0_i32_1 = arith.constant 0 : i32
    return %c0_i32, %c0_i32_0 : i32, i32
  }
  func.func @transform_2(%arg0: i32, %arg1: i32) -> (i32, i32) {
    %c0_i32 = arith.constant 0 : i32
    %c0_i32_0 = arith.constant 0 : i32
    %c0_i32_1 = arith.constant 0 : i32
    return %c0_i32, %c0_i32_0 : i32, i32
  }
  func.func @transform_3(%arg0: i32, %arg1: i32) -> (i32, i32) {
    %c0_i32 = arith.constant 0 : i32
    %c0_i32_0 = arith.constant 0 : i32
    %c0_i32_1 = arith.constant 0 : i32
    return %c0_i32, %c0_i32_0 : i32, i32
  }
  func.func @transform_4(%arg0: i32, %arg1: i32) -> (i32, i32) {
    %c0_i32 = arith.constant 0 : i32
    %c0_i32_0 = arith.constant 0 : i32
    %c0_i32_1 = arith.constant 0 : i32
    return %c0_i32, %c0_i32_0 : i32, i32
  }
  func.func @transform_5(%arg0: i32, %arg1: i32) -> (i32, i32) {
    %c0_i32 = arith.constant 0 : i32
    %c0_i32_0 = arith.constant 0 : i32
    %c0_i32_1 = arith.constant 0 : i32
    return %c0_i32, %c0_i32_0 : i32, i32
  }
  func.func @transform_6(%arg0: i32, %arg1: i32) -> i32 {
    %c0_i32 = arith.constant 0 : i32
    %c0_i32_0 = arith.constant 0 : i32
    return %c0_i32 : i32
  }
  func.func @transform_7(%arg0: i32, %arg1: i32) -> (i32, i32, i32) {
    %c0_i32 = arith.constant 0 : i32
    %c0_i32_0 = arith.constant 0 : i32
    return %arg1, %arg0, %c0_i32 : i32, i32, i32
  }
  func.func @transform_8(%arg0: i32, %arg1: i32) -> (i32, i32, i32) {
    %c0_i32 = arith.constant 0 : i32
    %c0_i32_0 = arith.constant 0 : i32
    return %arg1, %arg0, %c0_i32 : i32, i32, i32
  }
  func.func @transform_9(%arg0: i32, %arg1: i32) -> (i32, i32, i32) {
    %c0_i32 = arith.constant 0 : i32
    %c0_i32_0 = arith.constant 0 : i32
    return %arg1, %arg0, %c0_i32 : i32, i32, i32
  }
  func.func @transform_10(%arg0: i32, %arg1: i32) -> (i32, i32) {
    %c0_i32 = arith.constant 0 : i32
    %c0_i32_0 = arith.constant 0 : i32
    return %arg0, %c0_i32 : i32, i32
  }
  func.func @transform_11(%arg0: i32, %arg1: i32) -> (i32, i32) {
    %c0_i32 = arith.constant 0 : i32
    %c0_i32_0 = arith.constant 0 : i32
    return %arg0, %c0_i32 : i32, i32
  }
}

</mosaic_0001>

<bundles_post_ra>
// kernel: mdnrnn_forward.1
= control target key start
LH: loop header
LB: loop body
LE: loop exit
PB: predicated region body
PF: predicated region fallthrough
CT: control target
= control target key end

     0   :  { %17 = vsyncpa [#allocation6], 0  ;;  %s2377_s0 = inlined_call_operand.vmem [shape: bf16[8,2,36], index: 0, kind: input, shape index: {}]   ;;  %s2378_s1 = inlined_call_operand.vmem [shape: bf16[36,128], index: 1, kind: input, shape index: {}]   ;;  %s2379_s2 = inlined_call_operand.vmem [shape: bf16[32,128], index: 2, kind: input, shape index: {}]   ;;  %s2380_s3 = inlined_call_operand.vmem [shape: f32[1,128], index: 3, kind: input, shape index: {}]   ;;  %s2381_s4 = inlined_call_operand.vmem [shape: bf16[32,640], index: 4, kind: input, shape index: {}]   ;;  %s2382_s5 = inlined_call_operand.vmem [shape: f32[1,640], index: 5, kind: input, shape index: {}]   ;;  %s2383_s6 = inlined_call_operand.vmem [shape: f32[3], index: 6, kind: input, shape index: {}]   ;;  %s2384_s7 = inlined_call_operand.vmem [shape: f32[8,2,128], index: 7, kind: output, shape index: {0}]   ;;  %s2385_s8 = inlined_call_operand.vmem [shape: f32[8,2,256], index: 8, kind: output, shape index: {1}]   ;;  %s2386_s9 = inlined_call_operand.vmem [shape: f32[8,2,256], index: 9, kind: output, shape index: {2}]   ;;  %s2387_s10 = inlined_call_operand.hbm [shape: f32[2,32], index: 10, kind: output, shape index: {3}]   ;;  %s2388_s11 = inlined_call_operand.hbm [shape: f32[2,32], index: 11, kind: output, shape index: {4}]  }
   0x1   :  { %18 = vsyncpa [#allocation5], 0 }
   0x2   :  { %19 = vsyncpa [#allocation9], 0  ;;  %s38_s19 = sshll.u32 %s2383_s6, 4  ;;  %s39_s19 = int_to_ptr.vmem [resolvable:$true] %s38_s19 }
   0x3   :  { %s1838_s20 = scalar_lea.vmem %s39_s19, 16  ;;  %p1843_p1 = scmp.lt.s32.totalorder %s39_s19, %s39_s19 }
   0x4   :  { %p1839_p0 = scmp.ne.s32.totalorder %s39_s19, %s1838_s20  ;;  %p1844_p2 = scmp.lt.s32.totalorder %s1838_s20, %s1838_s20 }
   0x6   :  { %p1845_p3 = por %p1844_p2, %p1843_p1 }
   0x8   :  { %p1846_p4 = pnand %p1845_p3, %p1839_p0 }
   0xa   :  { %1849 = shalt.err (!%p1846_p4)
}
   0xb   :  { %s1900_s21 = smov [#allocation4]  }
   0xc   :  { %41 = dma.vmem_to_smem %s39_s19, 16, %s1900_s21, [#allocation6]  }
   0xd   :  { %1894 = dma.done.wait [#allocation6], 16  }
   0xe   :  { %1895 = vsyncadd [#allocation6], 4294967280 }
   0xf   :  { %45 = sfence }
  0x10   :  { %v1739_v0 = vld [vmem:[%s2378_s1] sm:$0xff]   ;;  %v1901_v1 = vmov 0.0   ;;  %v1740_v2 = vld [vmem:[%s2378_s1 + $0x8] sm:$0xff]   ;;  %vm150_vm0 = vcmask 1041408   ;;  %v89_v4 = vlaneseq  ;;  %vm1902_vm1 = vmmov 0   ;;  %s1906_s26 = smov 64  }
  0x11   :  { %1646 = vmatprep.subr.bf16.mxu0 %v1901_v1  ;;  %1656 = vmatprep.subr.bf16.mxu1 %v1901_v1  ;;  %v1741_v3 = vld [vmem:[%s2378_s1 + $0x10] ss:$0 sps:$4 sm:$0x33]   ;;  %v54_v5 = vld [vmem:[%s2377_s0] sm:$0x1]  ;;  %v2027_v19 = vld [vmem:[%s2379_s2 + $0x8] sm:$0xff]  }
  0x12   :  { %1647 = vmatpush3.bf16.msra.mxu0 %v1739_v0  ;;  %1652 = vmatprep.mubr.msk.bf16.mxu0 %vm1902_vm1, %v1901_v1  ;;  %v55_v6 = vld [vmem:[%s2377_s0 + $0x1] sm:$0x1]  ;;  %v152_v7 = vsel %vm150_vm0, %v1741_v3, 0  ;;  %v56_v8 = vld [vmem:[%s2377_s0 + $0x2] sm:$0x1]  ;;  %v2015_v14 = vshrl.u32 %v89_v4, 7 }
  0x13   :  { %1648 = vmatprep.subr.bf16.mxu0 %v1901_v1  ;;  %v57_v9 = vld [vmem:[%s2377_s0 + $0x3] sm:$0x1]  ;;  %v58_v10 = vld [vmem:[%s2377_s0 + $0x4] sm:$0x1]  ;;  %1660 = vmatprep.mubr.msk.bf16.mxu1 %vm1902_vm1, %v1901_v1  ;;  %v59_v11 = vld [vmem:[%s2377_s0 + $0x5] sm:$0x1]  ;;  %v82_v18 = vcombine.low %v54_v5, %v55_v6 }
  0x14   :  { %v60_v12 = vld [vmem:[%s2377_s0 + $0x6] sm:$0x1]  ;;  %v61_v13 = vld [vmem:[%s2377_s0 + $0x7] sm:$0x1]  ;;  %v1903_v16 = vmov 1966171168   ;;  %v83_v20 = vcombine.low %v56_v8, %v57_v9  ;;  %v84_v21 = vcombine.low %v58_v10, %v59_v11 }
  0x15   :  { %v2020_v15 = vld [vmem:[%s2379_s2] sm:$0xff]   ;;  %v87_v17 = vunpack.c.l.s4 %v1903_v16  ;;  %vm51_vm2 = vcmask 254976   ;;  %v85_v22 = vcombine.low %v60_v12, %v61_v13  ;;  %vm267_vm3 = vcmask 261120   ;;  %s2242_s0 = sld [smem:[#allocation4 + $0x1]]  ;;  %s1602_s21 = sld [smem:[#allocation4 + $0x2]] }
  0x16   :  { %1649 = vmatpush3.bf16.msra.mxu0 %v1740_v2  ;;  %1657 = vmatpush3.bf16.msra.mxu1 %v2020_v15  ;;  %52 = vst.msk [vmem:[#allocation7] sm:$0x3] %vm51_vm2, %v1901_v1  ;;  %53 = vst.msk [vmem:[#allocation8] sm:$0x3] %vm51_vm2, %v1901_v1  ;;  %vm146_vm4 = vcmask 293888   ;;  %vm359_vm5 = vcmask 253952  }
  0x17   :  { %1650 = vmatprep.subr.bf16.mxu0 %v1901_v1  ;;  %v88_v23 = vunpack.c.0.s8 %v87_v17  ;;  %1658 = vmatprep.subr.bf16.mxu1 %v1901_v1  ;;  %v1904_v36 = vmov 1983009808   ;;  %v1561_v39 = vld [vmem:[%s2380_s3] ss:$0 sm:$0xff]  ;;  %s1905_s3 = smov 32   ;;  %s1908_s12 = smov 96  }
  0x18   :  { %v199_v37 = vunpack.c.l.s4 %v1904_v36 }
  0x19   :  { %v2035_v24 = vsub.s32 %v88_v23, %v2015_v14 }
  0x1a   :  { %1651 = vmatpush3.bf16.msra.mxu0 %v152_v7  ;;  %1659 = vmatpush3.bf16.msra.mxu1 %v2027_v19  ;;  %v200_v38 = vunpack.c.0.s8 %v199_v37 }
  0x1b   :  { %1672 = vmatprep.subr.bf16.mxu0 %v1901_v1  ;;  %v92_v25 = vrot.slane %v82_v18, %v2035_v24  ;;  %v99_v26 = vrot.slane %v83_v20, %v2035_v24  ;;  %v106_v27 = vrot.slane %v84_v21, %v2035_v24  ;;  %v113_v28 = vrot.slane %v85_v22, %v2035_v24 }
  0x1c   :  { %1664 = vmatprep.subr.bf16.mxu1 %v1901_v1  ;;  %v2063_v41 = vsub.s32 %v200_v38, %v2015_v14 }
  0x1d   :  { %v114_v29 = vcombine.low %v92_v25, %v99_v26  ;;  %v115_v30 = vcombine.low %v106_v27, %v113_v28  ;;  %v251_v31 = vld [vmem:[#allocation7] sm:$0x3]  ;;  %v252_v0 = vld [vmem:[#allocation8] sm:$0x3] }
  0x1e   :  { %v254_v34 = vpack.c.bf16 %v251_v31, %v251_v31 }
  0x1f   :  { %v122_v32 = vrot.slane %v114_v29, %v2035_v24  ;;  %v129_v33 = vrot.slane %v115_v30, %v2035_v24 }
  0x20   :  { %1661 = vmatmul.mubr.msk.bf16.vlgmr.msra.gmra.mrb[0].mxu1 %vm267_vm3, %v254_v34 }
  0x21   :  { %v130_v35 = vcombine.low %v122_v32, %v129_v33  ;;  %1665 = vmatpush3.bf16.msra.mxu1 %v2020_v15  ;;  %1668 = vmatprep.mubr.msk.bf16.mxu1 %vm1902_vm1, %v1901_v1 }
  0x22   :  { %1666 = vmatprep.subr.bf16.mxu1 %v1901_v1 }
  0x23   :  { %1653 = vmatmul.mubr.msk.bf16.vlgmr.msra.gmra.mrb[0].mxu0 %vm146_vm4, %v130_v35 }
  0x24   :  { %1673 = vmatpush3.bf16.msra.mxu0 %v2020_v15  ;;  %1676 = vmatprep.mubr.msk.bf16.mxu0 %vm1902_vm1, %v1901_v1 }
  0x25   :  { %1674 = vmatprep.subr.bf16.mxu0 %v1901_v1  ;;  %1667 = vmatpush3.bf16.msra.mxu1 %v2027_v19 }
  0x26   :  { %1680 = vmatprep.subr.bf16.mxu1 %v1901_v1 }
  0x28   :  { %1675 = vmatpush3.bf16.msra.mxu0 %v2027_v19 }
  0x29   :  { %1688 = vmatprep.subr.bf16.mxu0 %v1901_v1 }
  0xf3   :  { %v305_v40 = vpop.f32.mrb[0].mxu1 }
  0xf4   :  { %v1662_v42 = vpop.f32.mrb[1].mxu1 }
  0xf5   :  { %v308_v44 = vpop.f32.mrb[2].mxu1 }
  0xf6   :  { %v188_v43 = vpop.f32.mrb[0].mxu0  ;;  %v1663_v47 = vpop.f32.mrb[3].mxu1 }
  0xf7   :  { %v189_v45 = vadd.f32 %v1561_v39, %v188_v43  ;;  %v1654_v46 = vpop.f32.mrb[1].mxu0 }
  0xf8   :  { %v191_v48 = vpop.f32.mrb[2].mxu0 }
  0xf9   :  { %v197_v49 = vcombine.high %v189_v45, %v189_v45  ;;  %v204_v50 = vrot.slane %v189_v45, %v2063_v41  ;;  %1566 = vst.sshfl [vmem:[#allocation2] sm:$0x3 pattern:$0x76325410] %v189_v45  ;;  %v192_v51 = vadd.f32 %v1561_v39, %v191_v48  ;;  %v1655_v52 = vpop.f32.mrb[3].mxu0 }
  0xfb   :  { %v211_v53 = vrot.slane %v197_v49, %v2063_v41  ;;  %v212_v54 = vcombine.high %v204_v50, %v204_v50  ;;  %1567 = vst.sshfl [vmem:[#allocation2 + $0x4] sm:$0x3 pattern:$0x76325410] %v197_v49  ;;  %v214_v55 = vcombine.high %v192_v51, %v192_v51  ;;  %v221_v56 = vrot.slane %v192_v51, %v2063_v41 }
  0xfc   :  { %1568 = vst.sshfl [vmem:[#allocation2 + $0x8] sm:$0x3 pattern:$0x76325410] %v192_v51 }
  0xfd   :  { %v213_v57 = vcombine.high %v211_v53, %v211_v53  ;;  %240 = vst [vmem:[#allocation2 + $0x2] sm:$0x3] %v212_v54  ;;  %v228_v58 = vrot.slane %v214_v55, %v2063_v41  ;;  %v229_v59 = vcombine.high %v221_v56, %v221_v56  ;;  %1569 = vst.sshfl [vmem:[#allocation2 + $0xc] sm:$0x3 pattern:$0x76325410] %v214_v55 }
  0xff   :  { %242 = vst [vmem:[#allocation2 + $0x6] sm:$0x3] %v213_v57  ;;  %v230_v60 = vcombine.high %v228_v58, %v228_v58  ;;  %244 = vst [vmem:[#allocation2 + $0xa] sm:$0x3] %v229_v59 }
 0x100   :  { %v253_v61 = vld [vmem:[#allocation2] sm:$0x3] }
 0x101   :  { %246 = vst [vmem:[#allocation2 + $0xe] sm:$0x3] %v230_v60  ;;  %v311_v62 = vadd.f32 %v305_v40, %v253_v61 }
 0x102   :  { %v455_v44 = vld [vmem:[#allocation2 + $0x4] sm:$0x3] }
 0x103   :  { %1758 = vtanh.f32 %v311_v62  ;;  %v1573_v2 = vmul.f32 -1.442695, %v311_v62 }
 0x104   :  { %v362_v21 = vld [vmem:[#allocation2 + $0x2] sm:$0x3] }
 0x105   :  { %1760 = vpow2.f32 %v1573_v2 }
 0x106   :  { %v548_v2 = vld [vmem:[#allocation2 + $0x6] sm:$0x3] }
 0x10d   :  { %v1759_v63 = vpop.eup %1758 }
 0x10e   :  { %325 = vrot.lane.b32.xlu0 %v1759_v63, %s1905_s3 }
 0x10f   :  { %v1761_v3 = vpop.eup %1760 }
 0x110   :  { %v315_v5 = vadd.f32 1.0, %v1761_v3 }
 0x112   :  { %320 = vrot.lane.b32.xlu0 %v252_v0, %s1905_s3  ;;  %1762 = vrcp.f32 %v315_v5 }
 0x11c   :  { %v1763_v6 = vpop.eup %1762 }
 0x180   :  { %v326_v7 = vpop.permute.xlu0 %325 }
 0x181   :  { %v328_v8 = vmul.f32 %v1763_v6, %v326_v7 }
 0x183   :  { %330 = vrot.lane.b32.xlu1 %v328_v8, %s1905_s3 }
 0x184   :  { %v321_v9 = vpop.permute.xlu0 %320 }
 0x185   :  { %v323_v10 = vmul.f32 %v1763_v6, %v321_v9 }
 0x1f5   :  { %v331_v11 = vpop.permute.xlu1 %330 }
 0x1f6   :  { %v333_v12 = vadd.f32 %v331_v11, %v323_v10 }
 0x1f8   :  { %1764 = vtanh.f32 %v333_v12 }
 0x202   :  { %v1765_v13 = vpop.eup %1764 }
 0x203   :  { %336 = vrot.lane.b32.xlu1 %v1765_v13, %s1905_s3 }
 0x275   :  { %v337_v16 = vpop.permute.xlu1 %336 }
 0x276   :  { %v339_v17 = vmul.f32 %v1763_v6, %v337_v16 }
 0x278   :  { %v2073_v18 = vpack.c.bf16 %v339_v17, %v339_v17 }
 0x27a   :  { %363 = vrot.lane.b32.xlu0 %v2073_v18, %s1906_s26 }
 0x2ec   :  { %v364_v20 = vpop.permute.xlu0 %363 }
 0x2ed   :  { %1669 = vmatmul.mubr.msk.bf16.vlgmr.msra.gmra.mrb[4].mxu1 %vm267_vm3, %v364_v20 }
 0x2ee   :  { %1681 = vmatpush3.bf16.msra.mxu1 %v2020_v15  ;;  %1684 = vmatprep.mubr.msk.bf16.mxu1 %vm1902_vm1, %v1901_v1 }
 0x2ef   :  { %1682 = vmatprep.subr.bf16.mxu1 %v1901_v1 }
 0x2f2   :  { %1683 = vmatpush3.bf16.msra.mxu1 %v2027_v19 }
 0x2f3   :  { %1696 = vmatprep.subr.bf16.mxu1 %v1901_v1 }
 0x3c0   :  { %v402_v22 = vpop.f32.mrb[4].mxu1 }
 0x3c1   :  { %v408_v23 = vadd.f32 %v402_v22, %v362_v21  ;;  %v1670_v25 = vpop.f32.mrb[5].mxu1 }
 0x3c2   :  { %v405_v26 = vpop.f32.mrb[6].mxu1 }
 0x3c3   :  { %1766 = vtanh.f32 %v408_v23  ;;  %v1671_v27 = vpop.f32.mrb[7].mxu1  ;;  %v1575_v29 = vmul.f32 -1.442695, %v408_v23 }
 0x3c5   :  { %1768 = vpow2.f32 %v1575_v29  ;;  %v641_v29 = vld [vmem:[#allocation2 + $0x8] sm:$0x3] }
 0x3cd   :  { %v1767_v28 = vpop.eup %1766 }
 0x3ce   :  { %418 = vrot.lane.b32.xlu1 %v1767_v28, %s1905_s3 }
 0x3cf   :  { %v1769_v30 = vpop.eup %1768 }
 0x3d0   :  { %v412_v31 = vadd.f32 1.0, %v1769_v30 }
 0x3d2   :  { %1770 = vrcp.f32 %v412_v31 }
 0x3dc   :  { %v1771_v32 = vpop.eup %1770 }
 0x3dd   :  { %v416_v35 = vmul.f32 %v1771_v32, %v333_v12 }
 0x440   :  { %v419_v33 = vpop.permute.xlu1 %418 }
 0x441   :  { %v421_v34 = vmul.f32 %v1771_v32, %v419_v33 }
 0x443   :  { %423 = vrot.lane.b32.xlu0 %v421_v34, %s1905_s3 }
 0x4b5   :  { %v424_v36 = vpop.permute.xlu0 %423 }
 0x4b6   :  { %v426_v37 = vadd.f32 %v424_v36, %v416_v35 }
 0x4b8   :  { %1772 = vtanh.f32 %v426_v37 }
 0x4c2   :  { %v1773_v38 = vpop.eup %1772 }
 0x4c3   :  { %429 = vrot.lane.b32.xlu1 %v1773_v38, %s1905_s3 }
 0x535   :  { %v430_v39 = vpop.permute.xlu1 %429 }
 0x536   :  { %v432_v40 = vmul.f32 %v1771_v32, %v430_v39 }
 0x538   :  { %v2087_v42 = vpack.c.bf16 %v432_v40, %v432_v40 }
 0x53a   :  { %456 = vrot.lane.b32.xlu0 %v2087_v42, %s1906_s26 }
 0x5ac   :  { %v457_v43 = vpop.permute.xlu0 %456 }
 0x5ad   :  { %1677 = vmatmul.mubr.msk.bf16.vlgmr.msra.gmra.mrb[4].mxu0 %vm267_vm3, %v457_v43 }
 0x5ae   :  { %1689 = vmatpush3.bf16.msra.mxu0 %v2020_v15  ;;  %1692 = vmatprep.mubr.msk.bf16.mxu0 %vm1902_vm1, %v1901_v1 }
 0x5af   :  { %1690 = vmatprep.subr.bf16.mxu0 %v1901_v1 }
 0x5b2   :  { %1691 = vmatpush3.bf16.msra.mxu0 %v2027_v19 }
 0x5b3   :  { %1704 = vmatprep.subr.bf16.mxu0 %v1901_v1 }
 0x680   :  { %v495_v45 = vpop.f32.mrb[4].mxu0 }
 0x681   :  { %v501_v46 = vadd.f32 %v495_v45, %v455_v44  ;;  %v1678_v47 = vpop.f32.mrb[5].mxu0 }
 0x682   :  { %v498_v48 = vpop.f32.mrb[6].mxu0 }
 0x683   :  { %1774 = vtanh.f32 %v501_v46  ;;  %v1679_v49 = vpop.f32.mrb[7].mxu0  ;;  %v1577_v51 = vmul.f32 -1.442695, %v501_v46 }
 0x685   :  { %1776 = vpow2.f32 %v1577_v51 }
 0x68d   :  { %v1775_v50 = vpop.eup %1774 }
 0x68e   :  { %511 = vrot.lane.b32.xlu1 %v1775_v50, %s1905_s3 }
 0x68f   :  { %v1777_v52 = vpop.eup %1776 }
 0x690   :  { %v505_v53 = vadd.f32 1.0, %v1777_v52  ;;  %v734_v52 = vld [vmem:[#allocation2 + $0xa] sm:$0x3] }
 0x692   :  { %1778 = vrcp.f32 %v505_v53 }
 0x69c   :  { %v1779_v54 = vpop.eup %1778 }
 0x69d   :  { %v509_v57 = vmul.f32 %v1779_v54, %v426_v37 }
 0x700   :  { %v512_v55 = vpop.permute.xlu1 %511 }
 0x701   :  { %v514_v56 = vmul.f32 %v1779_v54, %v512_v55 }
 0x703   :  { %516 = vrot.lane.b32.xlu0 %v514_v56, %s1905_s3 }
 0x775   :  { %v517_v58 = vpop.permute.xlu0 %516 }
 0x776   :  { %v519_v59 = vadd.f32 %v517_v58, %v509_v57 }
 0x778   :  { %1780 = vtanh.f32 %v519_v59 }
 0x782   :  { %v1781_v60 = vpop.eup %1780 }
 0x783   :  { %522 = vrot.lane.b32.xlu1 %v1781_v60, %s1905_s3 }
 0x7f5   :  { %v523_v61 = vpop.permute.xlu1 %522 }
 0x7f6   :  { %v525_v62 = vmul.f32 %v1779_v54, %v523_v61 }
 0x7f8   :  { %v2101_v63 = vpack.c.bf16 %v525_v62, %v525_v62 }
 0x7fa   :  { %549 = vrot.lane.b32.xlu0 %v2101_v63, %s1906_s26 }
 0x86c   :  { %v550_v0 = vpop.permute.xlu0 %549 }
 0x86d   :  { %1685 = vmatmul.mubr.msk.bf16.vlgmr.msra.gmra.mrb[8].mxu1 %vm267_vm3, %v550_v0 }
 0x86e   :  { %1697 = vmatpush3.bf16.msra.mxu1 %v2020_v15  ;;  %1700 = vmatprep.mubr.msk.bf16.mxu1 %vm1902_vm1, %v1901_v1 }
 0x86f   :  { %1698 = vmatprep.subr.bf16.mxu1 %v1901_v1 }
 0x872   :  { %1699 = vmatpush3.bf16.msra.mxu1 %v2027_v19 }
 0x873   :  { %1712 = vmatprep.subr.bf16.mxu1 %v1901_v1 }
 0x940   :  { %v588_v3 = vpop.f32.mrb[8].mxu1 }
 0x941   :  { %v594_v5 = vadd.f32 %v588_v3, %v548_v2  ;;  %v1686_v6 = vpop.f32.mrb[9].mxu1 }
 0x942   :  { %v591_v7 = vpop.f32.mrb[10].mxu1 }
 0x943   :  { %1782 = vtanh.f32 %v594_v5  ;;  %v1687_v8 = vpop.f32.mrb[11].mxu1  ;;  %v1579_v10 = vmul.f32 -1.442695, %v594_v5 }
 0x945   :  { %1784 = vpow2.f32 %v1579_v10  ;;  %v827_v10 = vld [vmem:[#allocation2 + $0xc] sm:$0x3] }
 0x94d   :  { %v1783_v9 = vpop.eup %1782 }
 0x94e   :  { %604 = vrot.lane.b32.xlu1 %v1783_v9, %s1905_s3 }
 0x94f   :  { %v1785_v11 = vpop.eup %1784 }
 0x950   :  { %v598_v12 = vadd.f32 1.0, %v1785_v11 }
 0x952   :  { %1786 = vrcp.f32 %v598_v12 }
 0x95c   :  { %v1787_v13 = vpop.eup %1786 }
 0x95d   :  { %v602_v20 = vmul.f32 %v1787_v13, %v519_v59 }
 0x9c0   :  { %v605_v16 = vpop.permute.xlu1 %604 }
 0x9c1   :  { %v607_v17 = vmul.f32 %v1787_v13, %v605_v16 }
 0x9c3   :  { %609 = vrot.lane.b32.xlu0 %v607_v17, %s1905_s3 }
 0xa35   :  { %v610_v21 = vpop.permute.xlu0 %609 }
 0xa36   :  { %v612_v22 = vadd.f32 %v610_v21, %v602_v20 }
 0xa38   :  { %1788 = vtanh.f32 %v612_v22 }
 0xa42   :  { %v1789_v23 = vpop.eup %1788 }
 0xa43   :  { %615 = vrot.lane.b32.xlu1 %v1789_v23, %s1905_s3 }
 0xab5   :  { %v616_v25 = vpop.permute.xlu1 %615 }
 0xab6   :  { %v618_v26 = vmul.f32 %v1787_v13, %v616_v25 }
 0xab8   :  { %v2115_v27 = vpack.c.bf16 %v618_v26, %v618_v26 }
 0xaba   :  { %642 = vrot.lane.b32.xlu0 %v2115_v27, %s1906_s26 }
 0xb2c   :  { %v643_v28 = vpop.permute.xlu0 %642 }
 0xb2d   :  { %1693 = vmatmul.mubr.msk.bf16.vlgmr.msra.gmra.mrb[8].mxu0 %vm267_vm3, %v643_v28 }
 0xb2e   :  { %1705 = vmatpush3.bf16.msra.mxu0 %v2020_v15  ;;  %1708 = vmatprep.mubr.msk.bf16.mxu0 %vm1902_vm1, %v1901_v1 }
 0xb2f   :  { %1706 = vmatprep.subr.bf16.mxu0 %v1901_v1 }
 0xb32   :  { %1707 = vmatpush3.bf16.msra.mxu0 %v2027_v19 }
 0xc00   :  { %v681_v30 = vpop.f32.mrb[8].mxu0 }
 0xc01   :  { %v687_v31 = vadd.f32 %v681_v30, %v641_v29  ;;  %v1694_v32 = vpop.f32.mrb[9].mxu0 }
 0xc02   :  { %v684_v33 = vpop.f32.mrb[10].mxu0 }
 0xc03   :  { %1790 = vtanh.f32 %v687_v31  ;;  %v1695_v34 = vpop.f32.mrb[11].mxu0  ;;  %v1581_v36 = vmul.f32 -1.442695, %v687_v31 }
 0xc05   :  { %1792 = vpow2.f32 %v1581_v36 }
 0xc0d   :  { %v1791_v35 = vpop.eup %1790 }
 0xc0e   :  { %697 = vrot.lane.b32.xlu1 %v1791_v35, %s1905_s3 }
 0xc0f   :  { %v1793_v37 = vpop.eup %1792 }
 0xc10   :  { %v691_v38 = vadd.f32 1.0, %v1793_v37  ;;  %v920_v37 = vld [vmem:[#allocation2 + $0xe] sm:$0x3] }
 0xc12   :  { %1794 = vrcp.f32 %v691_v38 }
 0xc1c   :  { %v1795_v39 = vpop.eup %1794 }
 0xc1d   :  { %v695_v44 = vmul.f32 %v1795_v39, %v612_v22 }
 0xc80   :  { %v698_v40 = vpop.permute.xlu1 %697 }
 0xc81   :  { %v700_v43 = vmul.f32 %v1795_v39, %v698_v40 }
 0xc83   :  { %702 = vrot.lane.b32.xlu0 %v700_v43, %s1905_s3 }
 0xcf5   :  { %v703_v45 = vpop.permute.xlu0 %702 }
 0xcf6   :  { %v705_v46 = vadd.f32 %v703_v45, %v695_v44 }
 0xcf8   :  { %1796 = vtanh.f32 %v705_v46 }
 0xd02   :  { %v1797_v47 = vpop.eup %1796 }
 0xd03   :  { %708 = vrot.lane.b32.xlu1 %v1797_v47, %s1905_s3 }
 0xd75   :  { %v709_v48 = vpop.permute.xlu1 %708 }
 0xd76   :  { %v711_v49 = vmul.f32 %v1795_v39, %v709_v48 }
 0xd78   :  { %v2128_v50 = vpack.c.bf16 %v711_v49, %v711_v49 }
 0xd7a   :  { %735 = vrot.lane.b32.xlu0 %v2128_v50, %s1906_s26 }
 0xdec   :  { %v736_v51 = vpop.permute.xlu0 %735 }
 0xded   :  { %1701 = vmatmul.mubr.msk.bf16.vlgmr.msra.gmra.mrb[12].mxu1 %vm267_vm3, %v736_v51 }
 0xdee   :  { %1713 = vmatpush3.bf16.msra.mxu1 %v2020_v15  ;;  %1716 = vmatprep.mubr.msk.bf16.mxu1 %vm1902_vm1, %v1901_v1 }
 0xdef   :  { %1714 = vmatprep.subr.bf16.mxu1 %v1901_v1 }
 0xdf2   :  { %1715 = vmatpush3.bf16.msra.mxu1 %v2027_v19 }
 0xec0   :  { %v774_v53 = vpop.f32.mrb[12].mxu1 }
 0xec1   :  { %v780_v54 = vadd.f32 %v774_v53, %v734_v52  ;;  %v1702_v55 = vpop.f32.mrb[13].mxu1  ;;  %v348_v52 = vrot.slane %v2073_v18, %v2035_v24 }
 0xec2   :  { %v777_v56 = vpop.f32.mrb[14].mxu1 }
 0xec3   :  { %1798 = vtanh.f32 %v780_v54  ;;  %v1703_v57 = vpop.f32.mrb[15].mxu1  ;;  %v1583_v59 = vmul.f32 -1.442695, %v780_v54  ;;  %v534_v54 = vrot.slane %v2101_v63, %v2035_v24  ;;  %v355_v55 = vrot.slane %v348_v52, %v2035_v24 }
 0xec4   :  { %v720_v56 = vrot.slane %v2128_v50, %v2035_v24 }
 0xec5   :  { %1800 = vpow2.f32 %v1583_v59  ;;  %v541_v57 = vrot.slane %v534_v54, %v2035_v24  ;;  %v1756_v54 = vld [vmem:[%s2381_s4 + $0x10] ss:$20 sps:$4 sm:$0xff]  }
 0xec6   :  { %v727_v18 = vrot.slane %v720_v56, %v2035_v24  ;;  %v1757_v56 = vld [vmem:[%s2381_s4 + $0x38] ss:$20 sps:$4 sm:$0xff]  }
 0xecd   :  { %v1799_v58 = vpop.eup %1798 }
 0xece   :  { %790 = vrot.lane.b32.xlu1 %v1799_v58, %s1905_s3 }
 0xecf   :  { %v1801_v15 = vpop.eup %1800 }
 0xed0   :  { %v784_v60 = vadd.f32 1.0, %v1801_v15 }
 0xed2   :  { %1802 = vrcp.f32 %v784_v60 }
 0xedc   :  { %v1803_v61 = vpop.eup %1802 }
 0xedd   :  { %v788_v19 = vmul.f32 %v1803_v61, %v705_v46 }
 0xf40   :  { %v791_v62 = vpop.permute.xlu1 %790 }
 0xf41   :  { %v793_v0 = vmul.f32 %v1803_v61, %v791_v62  ;;  %v441_v62 = vrot.slane %v2087_v42, %v2035_v24 }
 0xf43   :  { %795 = vrot.lane.b32.xlu0 %v793_v0, %s1905_s3 }
 0xfb5   :  { %v796_v2 = vpop.permute.xlu0 %795 }
 0xfb6   :  { %v798_v3 = vadd.f32 %v796_v2, %v788_v19  ;;  %v627_v2 = vrot.slane %v2115_v27, %v2035_v24  ;;  %v1744_v27 = vld [vmem:[%s2381_s4] ss:$20 sps:$4 sm:$0xff]  }
 0xfb8   :  { %1804 = vtanh.f32 %v798_v3  ;;  %v634_v42 = vrot.slane %v627_v2, %v2035_v24  ;;  %v1063_v2 = vsub.s32 4, %v2015_v14 }
 0xfc2   :  { %v1805_v5 = vpop.eup %1804 }
 0xfc3   :  { %801 = vrot.lane.b32.xlu1 %v1805_v5, %s1905_s3  ;;  %v448_v5 = vrot.slane %v441_v62, %v2035_v24 }
0x1035   :  { %v802_v6 = vpop.permute.xlu1 %801 }
0x1036   :  { %v804_v7 = vmul.f32 %v1803_v61, %v802_v6 }
0x1038   :  { %v2141_v8 = vpack.c.bf16 %v804_v7, %v804_v7 }
0x103a   :  { %828 = vrot.lane.b32.xlu0 %v2141_v8, %s1906_s26  ;;  %v813_v6 = vrot.slane %v2141_v8, %v2035_v24  ;;  %v1747_v8 = vld [vmem:[%s2381_s4 + $0x8] ss:$20 sps:$4 sm:$0xff]  }
0x103c   :  { %v820_v7 = vrot.slane %v813_v6, %v2035_v24 }
0x10ac   :  { %v829_v9 = vpop.permute.xlu0 %828 }
0x10ad   :  { %1709 = vmatmul.mubr.msk.bf16.vlgmr.msra.gmra.mrb[12].mxu0 %vm267_vm3, %v829_v9  ;;  %v1746_v9 = vld [vmem:[%s2381_s4 + $0x4] ss:$20 sps:$4 sm:$0xff]  }
0x10ae   :  { %1182 = vmatprep.subr.bf16.mxu0 %v1746_v9 }
0x10af   :  { %1183 = vmatpush1.bf16.msra.mxu0 %v1744_v27 }
0x1180   :  { %v867_v11 = vpop.f32.mrb[12].mxu0 }
0x1181   :  { %v873_v12 = vadd.f32 %v867_v11, %v827_v10  ;;  %v1710_v13 = vpop.f32.mrb[13].mxu0  ;;  %v1749_v10 = vld [vmem:[%s2381_s4 + $0xc] ss:$20 sps:$4 sm:$0xff]  }
0x1182   :  { %v870_v16 = vpop.f32.mrb[14].mxu0  ;;  %v1752_v11 = vld [vmem:[%s2381_s4 + $0x2c] ss:$20 sps:$4 sm:$0xff]   ;;  %1225 = vmatprep.subr.bf16.mxu1 %v1749_v10  ;;  %v1750_v13 = vld [vmem:[%s2381_s4 + $0x28] ss:$20 sps:$4 sm:$0xff]  }
0x1183   :  { %1806 = vtanh.f32 %v873_v12  ;;  %v1711_v17 = vpop.f32.mrb[15].mxu0  ;;  %v1585_v21 = vmul.f32 -1.442695, %v873_v12  ;;  %v1755_v12 = vld [vmem:[%s2381_s4 + $0x34] ss:$20 sps:$4 sm:$0xff]   ;;  %1184 = vmatprep.subr.bf16.mxu0 %v1752_v11 }
0x1184   :  { %v1753_v17 = vld [vmem:[%s2381_s4 + $0x30] ss:$20 sps:$4 sm:$0xff]   ;;  %1185 = vmatpush1.bf16.msra.mxu0 %v1750_v13 }
0x1185   :  { %1808 = vpow2.f32 %v1585_v21  ;;  %v1907_v21 = vmov 0   ;;  %1720 = vmatprep.subr.bf16.mxu0 %v1901_v1 }
0x1186   :  { %1214 = vmatprep.mubr.bf16.mxu0 %v1907_v21 }
0x118d   :  { %v1807_v20 = vpop.eup %1806 }
0x118e   :  { %883 = vrot.lane.b32.xlu1 %v1807_v20, %s1905_s3 }
0x118f   :  { %v1809_v22 = vpop.eup %1808 }
0x1190   :  { %v877_v23 = vadd.f32 1.0, %v1809_v22 }
0x1192   :  { %1810 = vrcp.f32 %v877_v23 }
0x119c   :  { %v1811_v25 = vpop.eup %1810 }
0x119d   :  { %v881_v29 = vmul.f32 %v1811_v25, %v798_v3 }
0x1200   :  { %v884_v26 = vpop.permute.xlu1 %883 }
0x1201   :  { %v886_v28 = vmul.f32 %v1811_v25, %v884_v26 }
0x1203   :  { %888 = vrot.lane.b32.xlu0 %v886_v28, %s1905_s3 }
0x1275   :  { %v889_v30 = vpop.permute.xlu0 %888 }
0x1276   :  { %v891_v31 = vadd.f32 %v889_v30, %v881_v29 }
0x1278   :  { %1812 = vtanh.f32 %v891_v31 }
0x1282   :  { %v1813_v32 = vpop.eup %1812 }
0x1283   :  { %894 = vrot.lane.b32.xlu1 %v1813_v32, %s1905_s3 }
0x12f5   :  { %v895_v33 = vpop.permute.xlu1 %894 }
0x12f6   :  { %v897_v34 = vmul.f32 %v1811_v25, %v895_v33 }
0x12f8   :  { %v898_v35 = vpack.c.bf16 %v897_v34, %v897_v34 }
0x12fa   :  { %921 = vrot.lane.b32.xlu0 %v898_v35, %s1906_s26  ;;  %v906_v58 = vrot.slane %v898_v35, %v2035_v24 }
0x12fc   :  { %v913_v59 = vrot.slane %v906_v58, %v2035_v24  ;;  %v1043_v58 = vld [vmem:[%s2382_s5] sm:$0x1f] }
0x136c   :  { %v922_v36 = vpop.permute.xlu0 %921 }
0x136d   :  { %1717 = vmatmul.mubr.msk.bf16.vlgmr.msra.gmra.mrb[16].mxu1 %vm267_vm3, %v922_v36 }
0x136e   :  { %1226 = vmatpush1.bf16.msra.mxu1 %v1747_v8  ;;  %1257 = vmatprep.mubr.bf16.mxu1 %v1907_v21 }
0x136f   :  { %1227 = vmatprep.subr.bf16.mxu1 %v1755_v12 }
0x1372   :  { %1228 = vmatpush1.bf16.msra.mxu1 %v1753_v17 }
0x1440   :  { %v960_v38 = vpop.f32.mrb[16].mxu1 }
0x1441   :  { %v966_v39 = vadd.f32 %v960_v38, %v920_v37  ;;  %v1718_v40 = vpop.f32.mrb[17].mxu1 }
0x1442   :  { %v963_v43 = vpop.f32.mrb[18].mxu1 }
0x1443   :  { %1814 = vtanh.f32 %v966_v39  ;;  %v1719_v44 = vpop.f32.mrb[19].mxu1  ;;  %v1587_v46 = vmul.f32 -1.442695, %v966_v39 }
0x1445   :  { %1816 = vpow2.f32 %v1587_v46 }
0x144d   :  { %v1815_v45 = vpop.eup %1814 }
0x144e   :  { %976 = vrot.lane.b32.xlu1 %v1815_v45, %s1905_s3 }
0x144f   :  { %v1817_v47 = vpop.eup %1816 }
0x1450   :  { %v970_v48 = vadd.f32 1.0, %v1817_v47 }
0x1452   :  { %1818 = vrcp.f32 %v970_v48 }
0x145c   :  { %v1819_v49 = vpop.eup %1818 }
0x145d   :  { %v974_v63 = vmul.f32 %v1819_v49, %v891_v31 }
0x14c0   :  { %v977_v51 = vpop.permute.xlu1 %976 }
0x14c1   :  { %v979_v53 = vmul.f32 %v1819_v49, %v977_v51 }
0x14c3   :  { %981 = vrot.lane.b32.xlu0 %v979_v53, %s1905_s3 }
0x14c7   :  { %356 = vrot.lane.b32.xlu0 %v355_v55, %s1906_s26 }
0x14cb   :  { %542 = vrot.lane.b32.xlu0 %v541_v57, %s1906_s26  ;;  %v1055_v57 = vsub.s32 2, %v2015_v14 }
0x14cf   :  { %728 = vrot.lane.b32.xlu0 %v727_v18, %s1906_s26  ;;  %v1051_v18 = vsub.s32 1, %v2015_v14 }
0x14d3   :  { %914 = vrot.lane.b32.xlu0 %v913_v59, %s1906_s26  ;;  %v1059_v59 = vsub.s32 3, %v2015_v14 }
0x1535   :  { %v982_v15 = vpop.permute.xlu0 %981 }
0x1536   :  { %v2168_v60 = vadd.f32 %v982_v15, %v974_v63  ;;  %v1052_v15 = vrot.slane %v1043_v58, %v1051_v18 }
0x1538   :  { %1820 = vtanh.f32 %v2168_v60 }
0x1539   :  { %v357_v50 = vpop.permute.xlu0 %356 }
0x153a   :  { %360 = vst.msk [vmem:[#allocation3] sm:$0x1] %vm359_vm5, %v357_v50  ;;  %v1060_v50 = vrot.slane %v1043_v58, %v1059_v59 }
0x153d   :  { %v543_v61 = vpop.permute.xlu0 %542 }
0x153e   :  { %546 = vst.msk [vmem:[#allocation3 + $0x2] sm:$0x1] %vm359_vm5, %v543_v61  ;;  %v1315_v61 = vand.u32 127, %v89_v4 }
0x1540   :  { %vm1316_vm6 = vcmp.lt.s32.totalorder %v1315_v61, 5 }
0x1541   :  { %v729_v0 = vpop.permute.xlu0 %728  ;;  %v1023_v35 = vld [vmem:[#allocation3] sm:$0x1] }
0x1542   :  { %v1821_v19 = vpop.eup %1820  ;;  %732 = vst.msk [vmem:[#allocation3 + $0x4] sm:$0x1] %vm359_vm5, %v729_v0 }
0x1543   :  { %987 = vrot.lane.b32.xlu1 %v1821_v19, %s1905_s3  ;;  %v1311_v19 = vstv %s2242_s0 }
0x1545   :  { %v915_v3 = vpop.permute.xlu0 %914  ;;  %v1025_v33 = vld [vmem:[#allocation3 + $0x2] sm:$0x1] }
0x1546   :  { %918 = vst.msk [vmem:[#allocation3 + $0x6] sm:$0x1] %vm359_vm5, %v915_v3 }
0x1547   :  { %449 = vrot.lane.b32.xlu1 %v448_v5, %s1906_s26 }
0x1549   :  { %v1027_v38 = vld [vmem:[#allocation3 + $0x4] sm:$0x1] }
0x154b   :  { %635 = vrot.lane.b32.xlu1 %v634_v42, %s1906_s26 }
0x154d   :  { %v1029_v43 = vld [vmem:[#allocation3 + $0x6] sm:$0x1] }
0x154f   :  { %821 = vrot.lane.b32.xlu1 %v820_v7, %s1906_s26 }
0x15b5   :  { %v988_v16 = vpop.permute.xlu1 %987 }
0x15b6   :  { %v2212_v20 = vmul.f32 %v1819_v49, %v988_v16 }
0x15b8   :  { %v991_v22 = vpack.c.bf16 %v2212_v20, %v2212_v20 }
0x15b9   :  { %v450_v23 = vpop.permute.xlu1 %449 }
0x15ba   :  { %v999_v25 = vrot.slane %v991_v22, %v2035_v24  ;;  %453 = vst.msk [vmem:[#allocation3 + $0x1] sm:$0x1] %vm359_vm5, %v450_v23  ;;  %v1064_v22 = vrot.slane %v1043_v58, %v1063_v2 }
0x15bc   :  { %v1006_v26 = vrot.slane %v999_v25, %v2035_v24 }
0x15bd   :  { %v636_v28 = vpop.permute.xlu1 %635 }
0x15be   :  { %639 = vst.msk [vmem:[#allocation3 + $0x3] sm:$0x1] %vm359_vm5, %v636_v28  ;;  %1007 = vrot.lane.b32.xlu1 %v1006_v26, %s1906_s26 }
0x15c1   :  { %v822_v29 = vpop.permute.xlu1 %821  ;;  %v1024_v32 = vld [vmem:[#allocation3 + $0x1] sm:$0x1] }
0x15c2   :  { %825 = vst.msk [vmem:[#allocation3 + $0x5] sm:$0x1] %vm359_vm5, %v822_v29  ;;  %v1078_v37 = vcombine.low %v1023_v35, %v1024_v32 }
0x15c4   :  { %v1088_v46 = vrot.slane %v1078_v37, %v2035_v24 }
0x15c5   :  { %v1026_v31 = vld [vmem:[#allocation3 + $0x3] sm:$0x1] }
0x15c6   :  { %v1079_v34 = vcombine.low %v1025_v33, %v1026_v31 }
0x15c8   :  { %v1095_v40 = vrot.slane %v1079_v34, %v2035_v24 }
0x15c9   :  { %v1028_v36 = vld [vmem:[#allocation3 + $0x5] sm:$0x1] }
0x15ca   :  { %v1080_v39 = vcombine.low %v1027_v38, %v1028_v36  ;;  %v1110_v49 = vcombine.low %v1088_v46, %v1095_v40 }
0x15cc   :  { %v1102_v47 = vrot.slane %v1080_v39, %v2035_v24  ;;  %v1118_v52 = vrot.slane %v1110_v49, %v2035_v24 }
0x1630   :  { %v1008_v30 = vpop.permute.xlu1 %1007 }
0x1631   :  { %1011 = vst.msk [vmem:[#allocation3 + $0x7] sm:$0x1] %vm359_vm5, %v1008_v30 }
0x1638   :  { %v1030_v44 = vld [vmem:[#allocation3 + $0x7] sm:$0x1] }
0x1639   :  { %v1081_v45 = vcombine.low %v1029_v43, %v1030_v44 }
0x163b   :  { %v1109_v48 = vrot.slane %v1081_v45, %v2035_v24 }
0x163d   :  { %v1111_v51 = vcombine.low %v1102_v47, %v1109_v48 }
0x163f   :  { %v1125_v53 = vrot.slane %v1111_v51, %v2035_v24  ;;  %v1047_v24 = vsub.s32 0, %v2015_v14 }
0x1641   :  { %v1126_v55 = vcombine.low %v1118_v52, %v1125_v53  ;;  %v1048_v63 = vrot.slane %v1043_v58, %v1047_v24 }
0x1643   :  { %1598 = vmatmul.mubr.msk.bf16.vlgmr.msra.gmra.mrb[16].mxu0 %vm267_vm3, %v1126_v55  ;;  %1599 = vmatmul.mubr.msk.bf16.vlgmr.msra.gmra.mrb[20].mxu1 %vm267_vm3, %v1126_v55 }
0x1644   :  { %1721 = vmatpush3.bf16.msra.mxu0 %v1756_v54  ;;  %1724 = vmatprep.mubr.msk.bf16.mxu0 %vm1902_vm1, %v1901_v1 }
0x1645   :  { %1722 = vmatprep.subr.bf16.mxu0 %v1901_v1  ;;  %v1056_v1 = vrot.slane %v1043_v58, %v1055_v57 }
0x1648   :  { %1723 = vmatpush3.bf16.msra.mxu0 %v1757_v56 }
0x164b   :  { %1725 = vmatmul.mubr.msk.bf16.vlgmr.msra.gmra.mrb[20].mxu0 %vm267_vm3, %v1126_v55  ;;  %v1459_v55 = vstv %s1602_s21 }
0x1716   :  { %v1216_v62 = vpop.f32.mrb[16].mxu0  ;;  %v1259_v0 = vpop.f32.mrb[20].mxu1 }
0x1717   :  { %v1217_v3 = vadd.f32 %v1216_v62, %v1048_v63  ;;  %v1260_v5 = vadd.f32 %v1259_v0, %v1056_v1  ;;  %v1218_v6 = vpop.f32.mrb[17].mxu0  ;;  %v1261_v42 = vpop.f32.mrb[21].mxu1 }
0x1718   :  { %v1219_v7 = vadd.f32 %v1218_v6, %v1052_v15  ;;  %v1262_v27 = vadd.f32 %v1261_v42, %v1060_v50  ;;  %v1220_v9 = vpop.f32.mrb[18].mxu0  ;;  %v1263_v8 = vpop.f32.mrb[22].mxu1 }
0x1719   :  { %v1221_v10 = vadd.f32 %v1220_v9, %v1048_v63  ;;  %v1264_v11 = vadd.f32 %v1263_v8, %v1056_v1  ;;  %v1222_v12 = vpop.f32.mrb[19].mxu0  ;;  %v1265_v13 = vpop.f32.mrb[23].mxu1  ;;  %v1312_v16 = vmul.f32 %v1311_v19, %v1217_v3 }
0x171a   :  { %v1395_v4 = vcombine.low %v1219_v7, %v1260_v5  ;;  %v1396_v17 = vcombine.high %v1219_v7, %v1260_v5  ;;  %v1223_v21 = vadd.f32 %v1222_v12, %v1052_v15  ;;  %v1447_v23 = vmul.f32 1.442695, %v1262_v27 }
0x171b   :  { %v1266_v14 = vadd.f32 %v1265_v13, %v1060_v50  ;;  %v2255_v25 = vsel %vm1316_vm6, %v1312_v16, -1e+30  ;;  %v1313_v26 = vmul.f32 %v1311_v19, %v1221_v10 }
0x171c   :  { %v1403_v28 = vrot.slane %v1395_v4, %v2063_v41  ;;  %v1410_v29 = vrot.slane %v1396_v17, %v2063_v41  ;;  %1607 = vst.sshfl [vmem:[%s2385_s8] sm:$0x33 pattern:$0x76325410] %v1395_v4  ;;  %v1413_v30 = vcombine.low %v1223_v21, %v1264_v11  ;;  %1319 = vmax.xlane.f32.xlu0 %v2255_v25  ;;  %1822 = vpow2.f32 %v1447_v23 }
0x171d   :  { %1608 = vst.sshfl [vmem:[%s2385_s8 + $0x8] sm:$0x33 pattern:$0x76325410] %v1396_v17  ;;  %v1414_v31 = vcombine.high %v1223_v21, %v1264_v11  ;;  %v1451_v32 = vmul.f32 1.442695, %v1266_v14 }
0x171e   :  { %v2267_v33 = vsel %vm1316_vm6, %v1313_v26, -1e+30  ;;  %v1411_v34 = vcombine.high %v1403_v28, %v1403_v28  ;;  %v1412_v35 = vcombine.high %v1410_v29, %v1410_v29  ;;  %v1421_v36 = vrot.slane %v1413_v30, %v2063_v41  ;;  %1609 = vst.sshfl [vmem:[%s2385_s8 + $0x10] sm:$0x33 pattern:$0x76325410] %v1413_v30 }
0x171f   :  { %v1302_v37 = vpop.f32.mrb[20].mxu0  ;;  %1321 = vmax.xlane.f32.xlu1 %v2267_v33  ;;  %v1428_v38 = vrot.slane %v1414_v31, %v2063_v41  ;;  %1610 = vst.sshfl [vmem:[%s2385_s8 + $0x18] sm:$0x33 pattern:$0x76325410] %v1414_v31  ;;  %1824 = vpow2.f32 %v1451_v32 }
0x1720   :  { %v1303_v39 = vadd.f32 %v1302_v37, %v1064_v22  ;;  %v1726_v40 = vpop.f32.mrb[21].mxu0  ;;  %1440 = vst [vmem:[%s2385_s8 + $0x4] sm:$0xf] %v1411_v34  ;;  %1442 = vst [vmem:[%s2385_s8 + $0xc] sm:$0xf] %v1412_v35  ;;  %v1429_v43 = vcombine.high %v1421_v36, %v1421_v36 }
0x1721   :  { %v1305_v44 = vpop.f32.mrb[22].mxu0  ;;  %v1430_v45 = vcombine.high %v1428_v38, %v1428_v38 }
0x1722   :  { %v1449_v46 = vmul.f32 1.442695, %v1303_v39  ;;  %v1306_v47 = vadd.f32 %v1305_v44, %v1064_v22  ;;  %v1727_v48 = vpop.f32.mrb[23].mxu0  ;;  %1444 = vst [vmem:[%s2385_s8 + $0x14] sm:$0xf] %v1429_v43 }
0x1723   :  { %1446 = vst [vmem:[%s2385_s8 + $0x1c] sm:$0xf] %v1430_v45 }
0x1724   :  { %1826 = vpow2.f32 %v1449_v46  ;;  %v1453_v49 = vmul.f32 1.442695, %v1306_v47 }
0x1726   :  { %1828 = vpow2.f32 %v1453_v49  ;;  %v1823_v51 = vpop.eup %1822 }
0x1727   :  { %v1455_v53 = vadd.f32 1e-15, %v1823_v51 }
0x1729   :  { %v1825_v52 = vpop.eup %1824  ;;  %v1460_v58 = vmul.f32 %v1459_v55, %v1455_v53 }
0x172a   :  { %v1457_v56 = vadd.f32 1e-15, %v1825_v52 }
0x172c   :  { %v1462_v63 = vmul.f32 %v1459_v55, %v1457_v56 }
0x172e   :  { %v1827_v54 = vpop.eup %1826 }
0x172f   :  { %v1456_v24 = vadd.f32 1e-15, %v1827_v54 }
0x1730   :  { %v1829_v57 = vpop.eup %1828  ;;  %1013 = vrot.lane.b32.xlu1 %v2212_v20, %s1906_s26 }
0x1731   :  { %v1461_v18 = vmul.f32 %v1459_v55, %v1456_v24  ;;  %v1458_v59 = vadd.f32 1e-15, %v1829_v57 }
0x1733   :  { %v1468_v1 = vcombine.low %v1460_v58, %v1461_v18  ;;  %v1469_v15 = vcombine.high %v1460_v58, %v1461_v18  ;;  %v1463_v50 = vmul.f32 %v1459_v55, %v1458_v59 }
0x1735   :  { %v1476_v61 = vrot.slane %v1468_v1, %v2063_v41  ;;  %v1483_v62 = vrot.slane %v1469_v15, %v2063_v41  ;;  %1611 = vst.sshfl [vmem:[%s2386_s9] sm:$0x33 pattern:$0x76325410] %v1468_v1  ;;  %v1486_v20 = vcombine.low %v1462_v63, %v1463_v50  ;;  %v1487_v0 = vcombine.high %v1462_v63, %v1463_v50 }
0x1736   :  { %1612 = vst.sshfl [vmem:[%s2386_s9 + $0x8] sm:$0x33 pattern:$0x76325410] %v1469_v15 }
0x1737   :  { %v1484_v19 = vcombine.high %v1476_v61, %v1476_v61  ;;  %v1485_v2 = vcombine.high %v1483_v62, %v1483_v62  ;;  %v1494_v3 = vrot.slane %v1486_v20, %v2063_v41  ;;  %v1501_v5 = vrot.slane %v1487_v0, %v2063_v41  ;;  %1613 = vst.sshfl [vmem:[%s2386_s9 + $0x10] sm:$0x33 pattern:$0x76325410] %v1486_v20 }
0x1738   :  { %1614 = vst.sshfl [vmem:[%s2386_s9 + $0x18] sm:$0x33 pattern:$0x76325410] %v1487_v0 }
0x1739   :  { %1513 = vst [vmem:[%s2386_s9 + $0x4] sm:$0xf] %v1484_v19  ;;  %1515 = vst [vmem:[%s2386_s9 + $0xc] sm:$0xf] %v1485_v2  ;;  %v1502_v6 = vcombine.high %v1494_v3, %v1494_v3  ;;  %v1503_v42 = vcombine.high %v1501_v5, %v1501_v5 }
0x173b   :  { %1517 = vst [vmem:[%s2386_s9 + $0x14] sm:$0xf] %v1502_v6  ;;  %1519 = vst [vmem:[%s2386_s9 + $0x1c] sm:$0xf] %v1503_v42  ;;  %s1909_s9 = smov [#allocation7]  }
0x173c   :  { %s1532_s13 = sshll.u32 %s1909_s9, 4  ;;  %s1533_s13 = int_to_ptr.vmem [resolvable:$true] %s1532_s13 }
0x173d   :  { %s1850_s1 = scalar_lea.vmem %s1533_s13, 32  ;;  %p1855_p6 = scmp.lt.s32.totalorder %s1533_s13, %s1533_s13 }
0x173e   :  { %p1851_p5 = scmp.ne.s32.totalorder %s1533_s13, %s1850_s1  ;;  %p1856_p7 = scmp.lt.s32.totalorder %s1850_s1, %s1850_s1 }
0x1740   :  { %p1857_p8 = por %p1856_p7, %p1855_p6 }
0x1742   :  { %p1858_p9 = pnand %p1857_p8, %p1851_p5 }
0x17a9   :  { %v1320_v7 = vpop.xlane.xlu0 %1319 }
0x17aa   :  { %v1323_v27 = vsub.f32 %v2255_v25, %v1320_v7 }
0x17ac   :  { %v1322_v9 = vpop.xlane.xlu1 %1321  ;;  %v1325_v8 = vmul.f32 1.442695, %v1323_v27 }
0x17ad   :  { %v1324_v10 = vsub.f32 %v2267_v33, %v1322_v9 }
0x17ae   :  { %1830 = vpow2.f32 %v1325_v8 }
0x17af   :  { %v1327_v11 = vmul.f32 1.442695, %v1324_v10 }
0x17b0   :  { %v1014_v12 = vpop.permute.xlu1 %1013 }
0x17b1   :  { %1017 = vst.msk [vmem:[#allocation7] sm:$0x3] %vm51_vm2, %v1014_v12  ;;  %1832 = vpow2.f32 %v1327_v11 }
0x17b8   :  { %v1831_v13 = vpop.eup %1830 }
0x17b9   :  { %1329 = vadd.xlane.f32.xlu0 %v1831_v13 }
0x17bb   :  { %v1833_v16 = vpop.eup %1832 }
0x17bd   :  { %1331 = vadd.xlane.f32.xlu0 %v1833_v16 }
0x17d3   :  { %1019 = vrot.lane.b32.xlu0 %v2168_v60, %s1908_s12 }
0x17d4   :  { %1861 = shalt.err (!%p1858_p9)
}
0x17d5   :  { %s1862_s16 = scalar_lea.hbm %s2387_s10, 32 }
0x17d6   :  { %p1863_p10 = scmp.ne.s32.totalorder %s2387_s10, %s1862_s16  ;;  %p1866_p11 = scmp.lt.u32.totalorder %s1862_s16, %s2387_s10 }
0x17d8   :  { %p1868_p12 = pnand %p1866_p11, %p1863_p10 }
0x17da   :  { %1871 = shalt.err (!%p1868_p12)
}
0x17db   :  { %1535 = dma.vmem_to_hbm [thread:$0]  %s1533_s13, 32, %s2387_s10, [#allocation5]  }
0x17dc   :  { %s1910_s22 = smov [#allocation8]  }
0x17dd   :  { %s1542_s23 = sshll.u32 %s1910_s22, 4  ;;  %s1543_s23 = int_to_ptr.vmem [resolvable:$true] %s1542_s23 }
0x17de   :  { %s1872_s6 = scalar_lea.vmem %s1543_s23, 32  ;;  %p1877_p0 = scmp.lt.s32.totalorder %s1543_s23, %s1543_s23 }
0x17df   :  { %p1873_p13 = scmp.ne.s32.totalorder %s1543_s23, %s1872_s6  ;;  %p1878_p1 = scmp.lt.s32.totalorder %s1872_s6, %s1872_s6 }
0x17e1   :  { %p1879_p2 = por %p1878_p1, %p1877_p0 }
0x17e3   :  { %p1880_p3 = pnand %p1879_p2, %p1873_p13 }
0x1846   :  { %v1330_v60 = vpop.xlane.xlu0 %1329 }
0x1847   :  { %1834 = vrcp.f32 %v1330_v60 }
0x184a   :  { %v1332_v4 = vpop.xlane.xlu0 %1331 }
0x184b   :  { %1836 = vrcp.f32 %v1332_v4 }
0x184e   :  { %v1020_v17 = vpop.permute.xlu0 %1019 }
0x184f   :  { %1022 = vst.msk [vmem:[#allocation8] sm:$0x3] %vm51_vm2, %v1020_v17 }
0x1850   :  { %1883 = shalt.err (!%p1880_p3)
}
0x1851   :  { %s1884_s10 = scalar_lea.hbm %s2388_s11, 32 }
0x1852   :  { %p1885_p4 = scmp.ne.s32.totalorder %s2388_s11, %s1884_s10  ;;  %p1888_p5 = scmp.lt.u32.totalorder %s1884_s10, %s2388_s11 }
0x1854   :  { %p1890_p6 = pnand %p1888_p5, %p1885_p4 }
0x1856   :  { %1893 = shalt.err (!%p1890_p6)
}
0x1857   :  { %1545 = dma.vmem_to_hbm [thread:$0]  %s1543_s23, 32, %s2388_s11, [#allocation9]   ;;  %v1835_v21 = vpop.eup %1834 }
0x1858   :  { %v1335_v22 = vmul.f32 %v1835_v21, %v1831_v13  ;;  %v1837_v14 = vpop.eup %1836 }
0x1859   :  { %v1336_v28 = vmul.f32 %v1837_v14, %v1833_v16 }
0x185a   :  { %v1337_v23 = vadd.f32 1e-15, %v1335_v22 }
0x185b   :  { %v1338_v31 = vadd.f32 1e-15, %v1336_v28 }
0x185c   :  { %v1341_v25 = vcombine.high %v1337_v23, %v1337_v23  ;;  %v1348_v26 = vrot.slane %v1337_v23, %v2063_v41  ;;  %1603 = vst.sshfl [vmem:[%s2384_s7] sm:$0x3 pattern:$0x76325410] %v1337_v23 }
0x185d   :  { %v1358_v33 = vcombine.high %v1338_v31, %v1338_v31  ;;  %v1365_v34 = vrot.slane %v1338_v31, %v2063_v41  ;;  %1605 = vst.sshfl [vmem:[%s2384_s7 + $0x8] sm:$0x3 pattern:$0x76325410] %v1338_v31 }
0x185e   :  { %v1355_v29 = vrot.slane %v1341_v25, %v2063_v41  ;;  %v1356_v30 = vcombine.high %v1348_v26, %v1348_v26  ;;  %1604 = vst.sshfl [vmem:[%s2384_s7 + $0x4] sm:$0x3 pattern:$0x76325410] %v1341_v25 }
0x185f   :  { %v1372_v35 = vrot.slane %v1358_v33, %v2063_v41  ;;  %v1373_v36 = vcombine.high %v1365_v34, %v1365_v34  ;;  %1606 = vst.sshfl [vmem:[%s2384_s7 + $0xc] sm:$0x3 pattern:$0x76325410] %v1358_v33 }
0x1860   :  { %v1357_v32 = vcombine.high %v1355_v29, %v1355_v29  ;;  %1384 = vst [vmem:[%s2384_s7 + $0x2] sm:$0x3] %v1356_v30 }
0x1861   :  { %v1374_v37 = vcombine.high %v1372_v35, %v1372_v35  ;;  %1388 = vst [vmem:[%s2384_s7 + $0xa] sm:$0x3] %v1373_v36 }
0x1862   :  { %1386 = vst [vmem:[%s2384_s7 + $0x6] sm:$0x3] %v1357_v32 }
0x1863   :  { %1390 = vst [vmem:[%s2384_s7 + $0xe] sm:$0x3] %v1374_v37 }
0x1864   :  { %1896 = dma.done.wait [#allocation5], 32  }
0x1865   :  { %1897 = vsyncadd [#allocation5], 4294967264 }
0x1866   :  { %1898 = dma.done.wait [#allocation9], 32  }
0x1867   :  { %1899 = vsyncadd [#allocation9], 4294967264 }
0x1868   :  { %1558 = vsyncpa [#allocation5], 1 }
0x1869   :  { %1559 = vsyncpa [#allocation9], 1 }
0x186a   :  { %1560 = vsyncpa [#allocation6], 1 }

</bundles_post_ra>
